<compile_context>
chip_gen: v5e
topology: v5e:2x2
jax: 0.10.0
libtpu: 0.0.40
codegen_flags: <defaults>
</compile_context>

<pallas_src>
import math
import functools

import jax
import jax.numpy as jnp
from jax.experimental import pallas as pl
from jax.experimental.pallas import tpu as pltpu


# ----------------------------- config ---------------------------------------
class Cfg:
    batch = 2
    c_in = 4              # nvars == M
    seq_len = 64
    patch_size = 8
    patch_stride = 8
    d_model = 32          # dims[0]
    num_blocks = 2        # num_blocks[0]
    small_size = 5        # depthwise conv kernel (odd -> 'same' length)
    n_memory = 10
    shrink_thres = 0.05


# ----------------------------- in-kernel math helpers ------------------------
def _gelu(x):
    # tanh-form GELU: one EUP tanh + a few VPU ops (review item: shorten the
    # serially-dependent erf chain).  |gelu_tanh - gelu_erf| <~ 1e-3, same
    # error class as the bf16 mixer matmuls used below.
    c = 0.7978845608028654          # sqrt(2/pi)
    return 0.5 * x * (1.0 + jnp.tanh(c * (x + 0.044715 * x * x * x)))


# ----------------------------- fused Pallas kernel ---------------------------
def _make_kernel(nb, ksz, mn, bd):
    """Build the fused kernel: downsample Linear -> Stage (all Blocks) -> LayerNorm.

    Activation layout: rows = channels (nvars*patch_num = 32),
                       lanes = (batch, d_model) folded (= 64).
    The activation never leaves VMEM/vregs between blocks; the only HBM
    traffic is the operand DMA at entry and one (MN, B*D) store at exit.
    """
    pad = ksz // 2
    base_c = nb * (ksz + 5)          # index of [bdown, ln_gamma, ln_beta] planes

    def kernel(patches_ref, wdown_ref, wmix_ref, planes_ref, avg_ref,
               o_ref, dwin_ref):
        # Zero the lane-padded depthwise window scratch once (its pad columns
        # are read with zero-masked weights, but must still hold finite data).
        dwin_ref[...] = jnp.zeros(dwin_ref.shape, dwin_ref.dtype)

        # downsample Linear(patch_size -> d_model); batch handled by a block-
        # diagonal (B*P, B*D) weight -> a single bf16 MXU matmul, f32 accum.
        h = jnp.dot(patches_ref[...], wdown_ref[...],
                    preferred_element_type=jnp.float32) + planes_ref[base_c + 0]

        for blk in range(nb):        # Stage: static unroll, h stays resident
            x0 = h
            base = blk * (ksz + 5)

            # depthwise Conv1d(K, padding=K//2, groups=MN) + fused eval BNs.
            # h is written once into the lane-padded scratch; each tap is a
            # static lane-offset window read + a full-vreg FMA with a weight
            # plane that already carries the BN scale and the per-d_model-block
            # (and batch-block) zero-padding mask.  No MXU ops, no shift
            # matrices, no unaligned value concatenates.
            dwin_ref[:, pad:pad + bd] = h
            conv = planes_ref[base + pad] * h          # center tap: no read
            for k in range(ksz):
                if k == pad:
                    continue
                conv = conv + planes_ref[base + k] * dwin_ref[:, k:k + bd]
            g = conv + planes_ref[base + ksz + 0]      # conv bias folded thru BN

            # ffnpw path: grouped 1x1 conv (groups=nvars) as a block-diag
            # channel mix; bf16 operands on the MXU, f32 accumulation.
            g = jnp.dot(wmix_ref[blk, 0], g.astype(jnp.bfloat16),
                        preferred_element_type=jnp.float32) + planes_ref[base + ksz + 1]
            g = _gelu(g)
            g = jnp.dot(wmix_ref[blk, 1], g.astype(jnp.bfloat16),
                        preferred_element_type=jnp.float32) + planes_ref[base + ksz + 2]

            # ffn1 path: grouped 1x1 conv (groups=patchnum); the (M,N)<->(N,M)
            # channel permutation is folded into the weights -> no transposes.
            g = jnp.dot(wmix_ref[blk, 2], g.astype(jnp.bfloat16),
                        preferred_element_type=jnp.float32) + planes_ref[base + ksz + 3]
            g = _gelu(g)
            g = jnp.dot(wmix_ref[blk, 3], g.astype(jnp.bfloat16),
                        preferred_element_type=jnp.float32) + planes_ref[base + ksz + 4]

            h = x0 + g                                 # residual

        # LayerNorm(d_model): per-(channel, batch) lane-block statistics via a
        # single block-averaging matmul on [h ; h*h] (mean and E[x^2] in one
        # MXU op, no serial dependency between the two statistics).
        stats = jnp.dot(jnp.concatenate([h, h * h], axis=0), avg_ref[...],
                        preferred_element_type=jnp.float32)
        mean = stats[:mn]
        var = stats[mn:] - mean * mean
        o_ref[...] = ((h - mean) * jax.lax.rsqrt(var + 1e-5)
                      * planes_ref[base_c + 1] + planes_ref[base_c + 2])

    return kernel


def _full_spec(arr):
    nd = arr.ndim
    return pl.BlockSpec(arr.shape, lambda i, nd=nd: (0,) * nd)


def mscn_feature_pallas(patches_l, pk):
    nb, _, mn, _ = pk['wmix'].shape
    bd = pk['wdown'].shape[1]
    ksz = (pk['planes'].shape[0] - 3) // nb - 5
    pad = ksz // 2
    kernel = _make_kernel(nb, ksz, mn, bd)
    args = (patches_l.astype(jnp.bfloat16), pk['wdown'], pk['wmix'],
            pk['planes'], pk['avg_mat'])
    return pl.pallas_call(
        kernel,
        out_shape=jax.ShapeDtypeStruct((mn, bd), jnp.float32),
        grid=(1,),                       # whole problem is a few vregs: 1 step, 1 TC
        in_specs=[_full_spec(a) for a in args],
        out_specs=pl.BlockSpec((mn, bd), lambda i: (0, 0)),
        scratch_shapes=[pltpu.VMEM((mn, bd + 2 * pad), jnp.float32)],
        compiler_params=pltpu.CompilerParams(
            dimension_semantics=("arbitrary",)),
    )(*args)


# ----------------------------- parameter setup (glue) ------------------------
def _make_block_params(keys_iter, M, N, D, K):
    MN = M * N

    def rnd(shape, scale=0.1):
        return scale * jax.random.normal(next(keys_iter), shape, dtype=jnp.float32)

    def runi(shape, lo, hi):
        return jax.random.uniform(next(keys_iter), shape, jnp.float32, lo, hi)

    wdw = rnd((MN, K), 0.2)
    bdw = rnd((MN,), 0.05)
    # BatchNorm1d(nvars*patchnum) eval-mode params / running stats
    g1, b1 = 1.0 + rnd((MN,), 0.05), rnd((MN,), 0.05)
    rm1, rv1 = rnd((MN,), 0.05), runi((MN,), 0.5, 1.5)
    # BatchNorm1d(patchnum)
    g2, b2 = 1.0 + rnd((N,), 0.05), rnd((N,), 0.05)
    rm2, rv2 = rnd((N,), 0.05), runi((N,), 0.5, 1.5)
    # grouped 1x1 convs: weight shapes (C_out, C_in/groups)
    wpw1, bpw1 = rnd((MN, N), 0.1), rnd((MN,), 0.05)   # ffnpw1, groups=nvars
    wpw2, bpw2 = rnd((MN, N), 0.1), rnd((MN,), 0.05)   # ffnpw2
    w1p1, b1p1 = rnd((MN, M), 0.1), rnd((MN,), 0.05)   # ffn1pw1, groups=patchnum
    w1p2, b1p2 = rnd((MN, M), 0.1), rnd((MN,), 0.05)   # ffn1pw2

    # fuse the two consecutive eval-mode batchnorms into one per-channel affine
    eps = 1e-5
    s1 = g1 / jnp.sqrt(rv1 + eps)
    sh1 = b1 - rm1 * s1
    tile = lambda v: jnp.tile(v, M)                 # channel c=m*N+n -> param[n]
    s2 = tile(g2) / jnp.sqrt(tile(rv2) + eps)
    sh2 = tile(b2) - tile(rm2) * s2
    scale = s1 * s2
    shift = sh1 * s2 + sh2

    def block_diag(w, groups):
        C, gin = w.shape
        gout = C // groups
        dense = jnp.zeros((C, C), jnp.float32)
        for g in range(groups):
            dense = dense.at[g * gout:(g + 1) * gout,
                             g * gin:(g + 1) * gin].set(w[g * gout:(g + 1) * gout])
        return dense

    Wp1 = block_diag(wpw1, groups=M)     # operates in (m*N+n) channel layout
    Wp2 = block_diag(wpw2, groups=M)
    BD1 = block_diag(w1p1, groups=N)     # operates in permuted (n*M+m) layout
    BD2 = block_diag(w1p2, groups=N)

    c = jnp.arange(MN)
    o2p = (c % N) * M + (c // N)         # original (m*N+n) -> permuted (n*M+m)
    A1 = BD1[:, o2p]                     # fold input permutation into ffn1pw1
    A2 = BD2[o2p, :]                     # fold inverse permutation into ffn1pw2
    a1b = b1p1
    a2b = b1p2[o2p]

    return dict(wdw=wdw, bdw=bdw, scale=scale, shift=shift,
                wp1=Wp1, bp1=bpw1, wp2=Wp2, bp2=bpw2,
                a1=A1, a1b=a1b, a2=A2, a2b=a2b)


def init_mscn_params(key, cfg):
    M, P, S, D = cfg.c_in, cfg.patch_size, cfg.patch_stride, cfg.d_model
    Np = cfg.seq_len // S
    keys = iter(jax.random.split(key, 512))

    def rnd(shape, scale=0.1):
        return scale * jax.random.normal(next(keys), shape, dtype=jnp.float32)

    params = {}
    # RevIN affine params
    params['revin_w'] = jnp.ones((M,), jnp.float32) + rnd((M,), 0.05)
    params['revin_b'] = rnd((M,), 0.05)
    # downsample_layer: Linear(patch_size, dims[0])
    params['w_down'] = rnd((P, D), 1.0 / math.sqrt(P))
    params['b_down'] = rnd((D,), 0.05)
    # Stage = num_blocks[0] Blocks
    params['blocks'] = [_make_block_params(keys, M, Np, D, cfg.small_size)
                        for _ in range(cfg.num_blocks)]
    # LayerNorm(d_model) (shared: features and memory read)
    params['ln_g'] = jnp.ones((D,), jnp.float32) + rnd((D,), 0.05)
    params['ln_b'] = rnd((D,), 0.05)
    # MemoryModule embedding (n_memory, d_model * patch_num)
    params['mem'] = rnd((cfg.n_memory, Np * D), 0.1)
    # head_dection1: Linear(d_model*2, patch_size)
    params['w_head'] = rnd((2 * D, P), 1.0 / math.sqrt(2 * D))
    params['b_head'] = rnd((P,), 0.05)
    return params


def pack_params(params, cfg):
    """Fold module parameters into the fused kernel's layout (runs ONCE, eagerly,
    outside jit, so there is no per-call wrapper cost)."""
    B, M = cfg.batch, cfg.c_in
    P, S, D = cfg.patch_size, cfg.patch_stride, cfg.d_model
    Np = cfg.seq_len // S
    MN, BD, K = M * Np, B * D, cfg.small_size
    pad = K // 2
    NB = cfg.num_blocks

    # downsample Linear as a block-diagonal (over batch) lane-mixing matrix,
    # stored bf16 for the single-pass MXU path (f32 accumulation in-kernel).
    wdown = jnp.kron(jnp.eye(B, dtype=jnp.float32),
                     params['w_down']).astype(jnp.bfloat16)      # (B*P, B*D)

    lane = jnp.arange(BD)
    d_of_lane = lane % D
    same_blk = (lane[:, None] // D) == (lane[None, :] // D)
    avg_mat = same_blk.astype(jnp.float32) / D                   # (BD, BD)

    # ONE packed f32 operand holding, per block: K depthwise tap planes
    # (tap weight * fused-BN scale, pre-broadcast over lanes, with the
    # d_model/batch block-boundary zero-padding mask folded in) followed by
    # 5 bias planes; plus a 3-plane tail (downsample bias, LN gamma, LN beta).
    planes, wmix_l = [], []
    for bp in params['blocks']:
        scale = bp['scale']
        for k in range(K):
            s = k - pad
            valid = ((d_of_lane + s >= 0) &
                     (d_of_lane + s < D)).astype(jnp.float32)
            planes.append((bp['wdw'][:, k] * scale)[:, None] * valid[None, :])
        bias0 = bp['shift'] + bp['bdw'] * scale          # conv bias folded thru BN
        for v in (bias0, bp['bp1'], bp['bp2'], bp['a1b'], bp['a2b']):
            planes.append(jnp.broadcast_to(v[:, None], (MN, BD)))
        # the four channel-mixing matrices, stored bf16 for the MXU
        wmix_l.append(jnp.stack([bp['wp1'], bp['wp2'],
                                 bp['a1'], bp['a2']]).astype(jnp.bfloat16))
    for v in (jnp.tile(params['b_down'], B), jnp.tile(params['ln_g'], B),
              jnp.tile(params['ln_b'], B)):
        planes.append(jnp.broadcast_to(v[None, :], (MN, BD)))

    return dict(
        wdown=wdown, avg_mat=avg_mat,
        planes=jnp.stack(planes).astype(jnp.float32),   # (NB*(K+5)+3, MN, BD) f32
        wmix=jnp.stack(wmix_l),                         # (NB, 4, MN, MN) bf16
        ln_g=params['ln_g'], ln_b=params['ln_b'],
        revin_w=params['revin_w'], revin_b=params['revin_b'],
        mem=params['mem'], w_head=params['w_head'], b_head=params['b_head'],
    )


# ----------------------------- MSCN forward ----------------------------------
def mscn_forward(packed, x, cfg):
    """x: (B, c_in, seq_len) float32 -> dict (matches MSCN.detection outputs)."""
    B, M, L = x.shape
    P, S, D = cfg.patch_size, cfg.patch_stride, cfg.d_model
    Np = cfg.seq_len // S
    MN = M * Np

    # ---- RevIN 'norm' (plain JAX; fuses with patching under XLA) ----
    # TODO(synk): RevIN class definition not provided in the reference source;
    # standard affine instance-norm (eps=1e-5) and the matching denorm
    # (subtract bias, divide by weight) implemented.
    xt = jnp.transpose(x, (0, 2, 1))                     # (B, L, M)
    mean = jnp.mean(xt, axis=1, keepdims=True)
    stdev = jnp.sqrt(jnp.var(xt, axis=1, keepdims=True) + 1e-5)
    xn = (xt - mean) / stdev
    xn = xn * packed['revin_w'] + packed['revin_b']
    x = jnp.transpose(xn, (0, 2, 1))                     # (B, M, L)

    # ---- patching (unfold) ----
    if P != S:
        pad_len = P - S
        x = jnp.concatenate([x, jnp.repeat(x[:, :, -1:], pad_len, axis=-1)], -1)
    idx = jnp.arange(Np)[:, None] * S + jnp.arange(P)[None, :]
    patches = x[:, :, idx]                               # (B, M, Np, P)
    # kernel layout: rows = channels m*Np+n, lanes = (batch, dim)
    patches_l = patches.transpose(1, 2, 0, 3).reshape(MN, B * P)

    # ---- ONE fused kernel: downsample + Stage (all Blocks) + LayerNorm ----
    xln_l = mscn_feature_pallas(patches_l, packed)       # (MN, B*D) f32
    xln = xln_l.reshape(M, Np, B, D).transpose(2, 0, 1, 3)   # (B, M, Np, D)

    # ---- memory module + detection head (tiny; left to XLA fusion) ----
    # TODO(synk): MemoryModule class definition not provided; standard memory
    # read (softmax over items + hard shrinkage) implemented; the training-time
    # memory update (update_flag) path is not implemented.
    k_x = xln.reshape(B, M, Np * D)
    mem = packed['mem']
    attn = jax.nn.softmax(jnp.einsum('bvf,mf->bvm', k_x, mem), axis=-1)
    if cfg.shrink_thres > 0:
        attn = (jax.nn.relu(attn - cfg.shrink_thres) * attn
                / (jnp.abs(attn - cfg.shrink_thres) + 1e-12))
        attn = attn / (jnp.sum(attn, axis=-1, keepdims=True) + 1e-12)
    read = jnp.einsum('bvm,mf->bvf', attn, mem).reshape(B, M, Np, D)

    rm = jnp.mean(read, axis=-1, keepdims=True)
    rv = jnp.mean(jnp.square(read - rm), axis=-1, keepdims=True)
    out = (read - rm) * jax.lax.rsqrt(rv + 1e-5) * packed['ln_g'] + packed['ln_b']

    xcat = jnp.concatenate([xln, out], axis=-1)          # (B, M, Np, 2D)
    y = jnp.einsum('bmnf,fp->bmnp', xcat, packed['w_head']) + packed['b_head']
    y = y.reshape(B, M, Np * P)[:, :, :cfg.seq_len]
    y = jnp.transpose(y, (0, 2, 1))                      # (B, seq_len, M)

    # ---- RevIN 'denorm' ----
    y = (y - packed['revin_b']) / (packed['revin_w'] + 1e-10)
    y = y * stdev + mean

    return {'out': y, 'memory_item_embedding': mem, 'queries': k_x,
            'mem': mem, 'attn': attn}


# ----------------------------- main -------------------------------------------
if __name__ == "__main__":
    cfg = Cfg()
    key = jax.random.PRNGKey(0)
    pkey, xkey = jax.random.split(key)

    params = init_mscn_params(pkey, cfg)
    packed = pack_params(params, cfg)        # one-time parameter folding
    x = jax.random.normal(xkey, (cfg.batch, cfg.c_in, cfg.seq_len), jnp.float32)

    fwd = jax.jit(functools.partial(mscn_forward, cfg=cfg))
    outputs = fwd(packed, x)
    jax.block_until_ready(outputs)

    assert outputs['out'].shape == (cfg.batch, cfg.seq_len, cfg.c_in)
    assert outputs['attn'].shape == (cfg.batch, cfg.c_in, cfg.n_memory)
    print("KERNEL_OK")
</pallas_src>

<mosaic_0001>
module attributes {stable_mosaic.version = 11 : i64} {
  func.func @kernel(%arg0: i32, %arg1: memref<32x16xbf16, #tpu.memory_space<vmem>>, %arg2: memref<16x64xbf16, #tpu.memory_space<vmem>>, %arg3: memref<2x4x32x32xbf16, #tpu.memory_space<vmem>>, %arg4: memref<23x32x64xf32, #tpu.memory_space<vmem>>, %arg5: memref<64x64xf32, #tpu.memory_space<vmem>>, %arg6: memref<32x64xf32, #tpu.memory_space<vmem>>, %arg7: memref<32x68xf32, #tpu.memory_space<vmem>>) attributes {dimension_semantics = [#tpu.dimension_semantics<arbitrary>], iteration_bounds = array<i64: 1>, scalar_prefetch = 0 : i64, scratch_operands = 1 : i64, tpu.core_type = #tpu.core_type<tc>, window_params = [{pipeline_mode = #tpu.pipeline_mode<synchronous>, transform_indices = @transform_0, window_bounds = array<i64: 32, 16>}, {pipeline_mode = #tpu.pipeline_mode<synchronous>, transform_indices = @transform_1, window_bounds = array<i64: 16, 64>}, {pipeline_mode = #tpu.pipeline_mode<synchronous>, transform_indices = @transform_2, window_bounds = array<i64: 2, 4, 32, 32>}, {pipeline_mode = #tpu.pipeline_mode<synchronous>, transform_indices = @transform_3, window_bounds = array<i64: 23, 32, 64>}, {pipeline_mode = #tpu.pipeline_mode<synchronous>, transform_indices = @transform_4, window_bounds = array<i64: 64, 64>}, {pipeline_mode = #tpu.pipeline_mode<synchronous>, transform_indices = @transform_5, window_bounds = array<i64: 32, 64>}]} {
    %cst = arith.constant 0.000000e+00 : f32
    %0 = vector.broadcast %cst : f32 to vector<32x68xf32>
    %c0 = arith.constant 0 : index
    %c0_0 = arith.constant 0 : index
    %1 = vector.load %arg7[%c0, %c0_0] : memref<32x68xf32, #tpu.memory_space<vmem>>, vector<32x68xf32>
    tpu.vector_store %arg7[%c0, %c0_0], %0 {strides = array<i32>} : memref<32x68xf32, #tpu.memory_space<vmem>>, vector<32x68xf32>,
    %c0_1 = arith.constant 0 : index
    %c0_2 = arith.constant 0 : index
    %2 = vector.load %arg1[%c0_1, %c0_2] : memref<32x16xbf16, #tpu.memory_space<vmem>>, vector<32x16xbf16>
    %c0_3 = arith.constant 0 : index
    %c0_4 = arith.constant 0 : index
    %3 = vector.load %arg2[%c0_3, %c0_4] : memref<16x64xbf16, #tpu.memory_space<vmem>>, vector<16x64xbf16>
    %cst_5 = arith.constant dense<0.000000e+00> : vector<32x64xf32>
    %4 = tpu.matmul %2, %3, %cst_5 {dimension_numbers = #tpu.dot_dimension_numbers<[1], [0], [0], [1], [0, 0, 1, 1], [], []>} : vector<32x16xbf16>, vector<16x64xbf16>, vector<32x64xf32> -> vector<32x64xf32>
    %c20 = arith.constant 20 : index
    %c0_6 = arith.constant 0 : index
    %c0_7 = arith.constant 0 : index
    %5 = vector.load %arg4[%c20, %c0_6, %c0_7] : memref<23x32x64xf32, #tpu.memory_space<vmem>>, vector<1x32x64xf32>
    %6 = vector.shape_cast %5 : vector<1x32x64xf32> to vector<32x64xf32>
    %7 = arith.addf %4, %6 : vector<32x64xf32>
    %c0_8 = arith.constant 0 : index
    %c2 = arith.constant 2 : index
    %8 = vector.load %arg7[%c0_8, %c2] : memref<32x68xf32, #tpu.memory_space<vmem>>, vector<32x64xf32>
    tpu.vector_store %arg7[%c0_8, %c2], %7 {strides = array<i32>} : memref<32x68xf32, #tpu.memory_space<vmem>>, vector<32x64xf32>,
    %c2_9 = arith.constant 2 : index
    %c0_10 = arith.constant 0 : index
    %c0_11 = arith.constant 0 : index
    %9 = vector.load %arg4[%c2_9, %c0_10, %c0_11] : memref<23x32x64xf32, #tpu.memory_space<vmem>>, vector<1x32x64xf32>
    %10 = vector.shape_cast %9 : vector<1x32x64xf32> to vector<32x64xf32>
    %11 = arith.mulf %10, %7 : vector<32x64xf32>
    %c0_12 = arith.constant 0 : index
    %c0_13 = arith.constant 0 : index
    %c0_14 = arith.constant 0 : index
    %12 = vector.load %arg4[%c0_12, %c0_13, %c0_14] : memref<23x32x64xf32, #tpu.memory_space<vmem>>, vector<1x32x64xf32>
    %13 = vector.shape_cast %12 : vector<1x32x64xf32> to vector<32x64xf32>
    %c0_15 = arith.constant 0 : index
    %c0_16 = arith.constant 0 : index
    %14 = vector.load %arg7[%c0_15, %c0_16] : memref<32x68xf32, #tpu.memory_space<vmem>>, vector<32x64xf32>
    %15 = arith.mulf %13, %14 : vector<32x64xf32>
    %16 = arith.addf %11, %15 : vector<32x64xf32>
    %c1 = arith.constant 1 : index
    %c0_17 = arith.constant 0 : index
    %c0_18 = arith.constant 0 : index
    %17 = vector.load %arg4[%c1, %c0_17, %c0_18] : memref<23x32x64xf32, #tpu.memory_space<vmem>>, vector<1x32x64xf32>
    %18 = vector.shape_cast %17 : vector<1x32x64xf32> to vector<32x64xf32>
    %c0_19 = arith.constant 0 : index
    %c1_20 = arith.constant 1 : index
    %19 = vector.load %arg7[%c0_19, %c1_20] : memref<32x68xf32, #tpu.memory_space<vmem>>, vector<32x64xf32>
    %20 = arith.mulf %18, %19 : vector<32x64xf32>
    %21 = arith.addf %16, %20 : vector<32x64xf32>
    %c3 = arith.constant 3 : index
    %c0_21 = arith.constant 0 : index
    %c0_22 = arith.constant 0 : index
    %22 = vector.load %arg4[%c3, %c0_21, %c0_22] : memref<23x32x64xf32, #tpu.memory_space<vmem>>, vector<1x32x64xf32>
    %23 = vector.shape_cast %22 : vector<1x32x64xf32> to vector<32x64xf32>
    %c0_23 = arith.constant 0 : index
    %c3_24 = arith.constant 3 : index
    %24 = vector.load %arg7[%c0_23, %c3_24] : memref<32x68xf32, #tpu.memory_space<vmem>>, vector<32x64xf32>
    %25 = arith.mulf %23, %24 : vector<32x64xf32>
    %26 = arith.addf %21, %25 : vector<32x64xf32>
    %c4 = arith.constant 4 : index
    %c0_25 = arith.constant 0 : index
    %c0_26 = arith.constant 0 : index
    %27 = vector.load %arg4[%c4, %c0_25, %c0_26] : memref<23x32x64xf32, #tpu.memory_space<vmem>>, vector<1x32x64xf32>
    %28 = vector.shape_cast %27 : vector<1x32x64xf32> to vector<32x64xf32>
    %c0_27 = arith.constant 0 : index
    %c4_28 = arith.constant 4 : index
    %29 = vector.load %arg7[%c0_27, %c4_28] : memref<32x68xf32, #tpu.memory_space<vmem>>, vector<32x64xf32>
    %30 = arith.mulf %28, %29 : vector<32x64xf32>
    %31 = arith.addf %26, %30 : vector<32x64xf32>
    %c5 = arith.constant 5 : index
    %c0_29 = arith.constant 0 : index
    %c0_30 = arith.constant 0 : index
    %32 = vector.load %arg4[%c5, %c0_29, %c0_30] : memref<23x32x64xf32, #tpu.memory_space<vmem>>, vector<1x32x64xf32>
    %33 = vector.shape_cast %32 : vector<1x32x64xf32> to vector<32x64xf32>
    %34 = arith.addf %31, %33 : vector<32x64xf32>
    %c0_31 = arith.constant 0 : index
    %c0_32 = arith.constant 0 : index
    %c0_33 = arith.constant 0 : index
    %c0_34 = arith.constant 0 : index
    %35 = vector.load %arg3[%c0_31, %c0_32, %c0_33, %c0_34] : memref<2x4x32x32xbf16, #tpu.memory_space<vmem>>, vector<1x1x32x32xbf16>
    %36 = vector.shape_cast %35 : vector<1x1x32x32xbf16> to vector<32x32xbf16>
    %37 = arith.truncf %34 : vector<32x64xf32> to vector<32x64xbf16>
    %cst_35 = arith.constant dense<0.000000e+00> : vector<32x64xf32>
    %38 = tpu.matmul %36, %37, %cst_35 {dimension_numbers = #tpu.dot_dimension_numbers<[1], [0], [0], [1], [0, 0, 1, 1], [], []>} : vector<32x32xbf16>, vector<32x64xbf16>, vector<32x64xf32> -> vector<32x64xf32>
    %c6 = arith.constant 6 : index
    %c0_36 = arith.constant 0 : index
    %c0_37 = arith.constant 0 : index
    %39 = vector.load %arg4[%c6, %c0_36, %c0_37] : memref<23x32x64xf32, #tpu.memory_space<vmem>>, vector<1x32x64xf32>
    %40 = vector.shape_cast %39 : vector<1x32x64xf32> to vector<32x64xf32>
    %41 = arith.addf %38, %40 : vector<32x64xf32>
    %cst_38 = arith.constant 5.000000e-01 : f32
    %42 = vector.broadcast %cst_38 : f32 to vector<32x64xf32>
    %43 = arith.mulf %42, %41 : vector<32x64xf32>
    %cst_39 = arith.constant 4.471500e-02 : f32
    %44 = vector.broadcast %cst_39 : f32 to vector<32x64xf32>
    %45 = arith.mulf %44, %41 : vector<32x64xf32>
    %46 = arith.mulf %45, %41 : vector<32x64xf32>
    %47 = arith.mulf %46, %41 : vector<32x64xf32>
    %48 = arith.addf %41, %47 : vector<32x64xf32>
    %cst_40 = arith.constant 0.797884583 : f32
    %49 = vector.broadcast %cst_40 : f32 to vector<32x64xf32>
    %50 = arith.mulf %49, %48 : vector<32x64xf32>
    %51 = math.tanh %50 : vector<32x64xf32>
    %cst_41 = arith.constant 1.000000e+00 : f32
    %52 = vector.broadcast %cst_41 : f32 to vector<32x64xf32>
    %53 = arith.addf %52, %51 : vector<32x64xf32>
    %54 = arith.mulf %43, %53 : vector<32x64xf32>
    %c0_42 = arith.constant 0 : index
    %c1_43 = arith.constant 1 : index
    %c0_44 = arith.constant 0 : index
    %c0_45 = arith.constant 0 : index
    %55 = vector.load %arg3[%c0_42, %c1_43, %c0_44, %c0_45] : memref<2x4x32x32xbf16, #tpu.memory_space<vmem>>, vector<1x1x32x32xbf16>
    %56 = vector.shape_cast %55 : vector<1x1x32x32xbf16> to vector<32x32xbf16>
    %57 = arith.truncf %54 : vector<32x64xf32> to vector<32x64xbf16>
    %cst_46 = arith.constant dense<0.000000e+00> : vector<32x64xf32>
    %58 = tpu.matmul %56, %57, %cst_46 {dimension_numbers = #tpu.dot_dimension_numbers<[1], [0], [0], [1], [0, 0, 1, 1], [], []>} : vector<32x32xbf16>, vector<32x64xbf16>, vector<32x64xf32> -> vector<32x64xf32>
    %c7 = arith.constant 7 : index
    %c0_47 = arith.constant 0 : index
    %c0_48 = arith.constant 0 : index
    %59 = vector.load %arg4[%c7, %c0_47, %c0_48] : memref<23x32x64xf32, #tpu.memory_space<vmem>>, vector<1x32x64xf32>
    %60 = vector.shape_cast %59 : vector<1x32x64xf32> to vector<32x64xf32>
    %61 = arith.addf %58, %60 : vector<32x64xf32>
    %c0_49 = arith.constant 0 : index
    %c2_50 = arith.constant 2 : index
    %c0_51 = arith.constant 0 : index
    %c0_52 = arith.constant 0 : index
    %62 = vector.load %arg3[%c0_49, %c2_50, %c0_51, %c0_52] : memref<2x4x32x32xbf16, #tpu.memory_space<vmem>>, vector<1x1x32x32xbf16>
    %63 = vector.shape_cast %62 : vector<1x1x32x32xbf16> to vector<32x32xbf16>
    %64 = arith.truncf %61 : vector<32x64xf32> to vector<32x64xbf16>
    %cst_53 = arith.constant dense<0.000000e+00> : vector<32x64xf32>
    %65 = tpu.matmul %63, %64, %cst_53 {dimension_numbers = #tpu.dot_dimension_numbers<[1], [0], [0], [1], [0, 0, 1, 1], [], []>} : vector<32x32xbf16>, vector<32x64xbf16>, vector<32x64xf32> -> vector<32x64xf32>
    %c8 = arith.constant 8 : index
    %c0_54 = arith.constant 0 : index
    %c0_55 = arith.constant 0 : index
    %66 = vector.load %arg4[%c8, %c0_54, %c0_55] : memref<23x32x64xf32, #tpu.memory_space<vmem>>, vector<1x32x64xf32>
    %67 = vector.shape_cast %66 : vector<1x32x64xf32> to vector<32x64xf32>
    %68 = arith.addf %65, %67 : vector<32x64xf32>
    %cst_56 = arith.constant 5.000000e-01 : f32
    %69 = vector.broadcast %cst_56 : f32 to vector<32x64xf32>
    %70 = arith.mulf %69, %68 : vector<32x64xf32>
    %cst_57 = arith.constant 4.471500e-02 : f32
    %71 = vector.broadcast %cst_57 : f32 to vector<32x64xf32>
    %72 = arith.mulf %71, %68 : vector<32x64xf32>
    %73 = arith.mulf %72, %68 : vector<32x64xf32>
    %74 = arith.mulf %73, %68 : vector<32x64xf32>
    %75 = arith.addf %68, %74 : vector<32x64xf32>
    %cst_58 = arith.constant 0.797884583 : f32
    %76 = vector.broadcast %cst_58 : f32 to vector<32x64xf32>
    %77 = arith.mulf %76, %75 : vector<32x64xf32>
    %78 = math.tanh %77 : vector<32x64xf32>
    %cst_59 = arith.constant 1.000000e+00 : f32
    %79 = vector.broadcast %cst_59 : f32 to vector<32x64xf32>
    %80 = arith.addf %79, %78 : vector<32x64xf32>
    %81 = arith.mulf %70, %80 : vector<32x64xf32>
    %c0_60 = arith.constant 0 : index
    %c3_61 = arith.constant 3 : index
    %c0_62 = arith.constant 0 : index
    %c0_63 = arith.constant 0 : index
    %82 = vector.load %arg3[%c0_60, %c3_61, %c0_62, %c0_63] : memref<2x4x32x32xbf16, #tpu.memory_space<vmem>>, vector<1x1x32x32xbf16>
    %83 = vector.shape_cast %82 : vector<1x1x32x32xbf16> to vector<32x32xbf16>
    %84 = arith.truncf %81 : vector<32x64xf32> to vector<32x64xbf16>
    %cst_64 = arith.constant dense<0.000000e+00> : vector<32x64xf32>
    %85 = tpu.matmul %83, %84, %cst_64 {dimension_numbers = #tpu.dot_dimension_numbers<[1], [0], [0], [1], [0, 0, 1, 1], [], []>} : vector<32x32xbf16>, vector<32x64xbf16>, vector<32x64xf32> -> vector<32x64xf32>
    %c9 = arith.constant 9 : index
    %c0_65 = arith.constant 0 : index
    %c0_66 = arith.constant 0 : index
    %86 = vector.load %arg4[%c9, %c0_65, %c0_66] : memref<23x32x64xf32, #tpu.memory_space<vmem>>, vector<1x32x64xf32>
    %87 = vector.shape_cast %86 : vector<1x32x64xf32> to vector<32x64xf32>
    %88 = arith.addf %85, %87 : vector<32x64xf32>
    %89 = arith.addf %7, %88 : vector<32x64xf32>
    %c0_67 = arith.constant 0 : index
    %c2_68 = arith.constant 2 : index
    %90 = vector.load %arg7[%c0_67, %c2_68] : memref<32x68xf32, #tpu.memory_space<vmem>>, vector<32x64xf32>
    tpu.vector_store %arg7[%c0_67, %c2_68], %89 {strides = array<i32>} : memref<32x68xf32, #tpu.memory_space<vmem>>, vector<32x64xf32>,
    %c12 = arith.constant 12 : index
    %c0_69 = arith.constant 0 : index
    %c0_70 = arith.constant 0 : index
    %91 = vector.load %arg4[%c12, %c0_69, %c0_70] : memref<23x32x64xf32, #tpu.memory_space<vmem>>, vector<1x32x64xf32>
    %92 = vector.shape_cast %91 : vector<1x32x64xf32> to vector<32x64xf32>
    %93 = arith.mulf %92, %89 : vector<32x64xf32>
    %c10 = arith.constant 10 : index
    %c0_71 = arith.constant 0 : index
    %c0_72 = arith.constant 0 : index
    %94 = vector.load %arg4[%c10, %c0_71, %c0_72] : memref<23x32x64xf32, #tpu.memory_space<vmem>>, vector<1x32x64xf32>
    %95 = vector.shape_cast %94 : vector<1x32x64xf32> to vector<32x64xf32>
    %c0_73 = arith.constant 0 : index
    %c0_74 = arith.constant 0 : index
    %96 = vector.load %arg7[%c0_73, %c0_74] : memref<32x68xf32, #tpu.memory_space<vmem>>, vector<32x64xf32>
    %97 = arith.mulf %95, %96 : vector<32x64xf32>
    %98 = arith.addf %93, %97 : vector<32x64xf32>
    %c11 = arith.constant 11 : index
    %c0_75 = arith.constant 0 : index
    %c0_76 = arith.constant 0 : index
    %99 = vector.load %arg4[%c11, %c0_75, %c0_76] : memref<23x32x64xf32, #tpu.memory_space<vmem>>, vector<1x32x64xf32>
    %100 = vector.shape_cast %99 : vector<1x32x64xf32> to vector<32x64xf32>
    %c0_77 = arith.constant 0 : index
    %c1_78 = arith.constant 1 : index
    %101 = vector.load %arg7[%c0_77, %c1_78] : memref<32x68xf32, #tpu.memory_space<vmem>>, vector<32x64xf32>
    %102 = arith.mulf %100, %101 : vector<32x64xf32>
    %103 = arith.addf %98, %102 : vector<32x64xf32>
    %c13 = arith.constant 13 : index
    %c0_79 = arith.constant 0 : index
    %c0_80 = arith.constant 0 : index
    %104 = vector.load %arg4[%c13, %c0_79, %c0_80] : memref<23x32x64xf32, #tpu.memory_space<vmem>>, vector<1x32x64xf32>
    %105 = vector.shape_cast %104 : vector<1x32x64xf32> to vector<32x64xf32>
    %c0_81 = arith.constant 0 : index
    %c3_82 = arith.constant 3 : index
    %106 = vector.load %arg7[%c0_81, %c3_82] : memref<32x68xf32, #tpu.memory_space<vmem>>, vector<32x64xf32>
    %107 = arith.mulf %105, %106 : vector<32x64xf32>
    %108 = arith.addf %103, %107 : vector<32x64xf32>
    %c14 = arith.constant 14 : index
    %c0_83 = arith.constant 0 : index
    %c0_84 = arith.constant 0 : index
    %109 = vector.load %arg4[%c14, %c0_83, %c0_84] : memref<23x32x64xf32, #tpu.memory_space<vmem>>, vector<1x32x64xf32>
    %110 = vector.shape_cast %109 : vector<1x32x64xf32> to vector<32x64xf32>
    %c0_85 = arith.constant 0 : index
    %c4_86 = arith.constant 4 : index
    %111 = vector.load %arg7[%c0_85, %c4_86] : memref<32x68xf32, #tpu.memory_space<vmem>>, vector<32x64xf32>
    %112 = arith.mulf %110, %111 : vector<32x64xf32>
    %113 = arith.addf %108, %112 : vector<32x64xf32>
    %c15 = arith.constant 15 : index
    %c0_87 = arith.constant 0 : index
    %c0_88 = arith.constant 0 : index
    %114 = vector.load %arg4[%c15, %c0_87, %c0_88] : memref<23x32x64xf32, #tpu.memory_space<vmem>>, vector<1x32x64xf32>
    %115 = vector.shape_cast %114 : vector<1x32x64xf32> to vector<32x64xf32>
    %116 = arith.addf %113, %115 : vector<32x64xf32>
    %c1_89 = arith.constant 1 : index
    %c0_90 = arith.constant 0 : index
    %c0_91 = arith.constant 0 : index
    %c0_92 = arith.constant 0 : index
    %117 = vector.load %arg3[%c1_89, %c0_90, %c0_91, %c0_92] : memref<2x4x32x32xbf16, #tpu.memory_space<vmem>>, vector<1x1x32x32xbf16>
    %118 = vector.shape_cast %117 : vector<1x1x32x32xbf16> to vector<32x32xbf16>
    %119 = arith.truncf %116 : vector<32x64xf32> to vector<32x64xbf16>
    %cst_93 = arith.constant dense<0.000000e+00> : vector<32x64xf32>
    %120 = tpu.matmul %118, %119, %cst_93 {dimension_numbers = #tpu.dot_dimension_numbers<[1], [0], [0], [1], [0, 0, 1, 1], [], []>} : vector<32x32xbf16>, vector<32x64xbf16>, vector<32x64xf32> -> vector<32x64xf32>
    %c16 = arith.constant 16 : index
    %c0_94 = arith.constant 0 : index
    %c0_95 = arith.constant 0 : index
    %121 = vector.load %arg4[%c16, %c0_94, %c0_95] : memref<23x32x64xf32, #tpu.memory_space<vmem>>, vector<1x32x64xf32>
    %122 = vector.shape_cast %121 : vector<1x32x64xf32> to vector<32x64xf32>
    %123 = arith.addf %120, %122 : vector<32x64xf32>
    %cst_96 = arith.constant 5.000000e-01 : f32
    %124 = vector.broadcast %cst_96 : f32 to vector<32x64xf32>
    %125 = arith.mulf %124, %123 : vector<32x64xf32>
    %cst_97 = arith.constant 4.471500e-02 : f32
    %126 = vector.broadcast %cst_97 : f32 to vector<32x64xf32>
    %127 = arith.mulf %126, %123 : vector<32x64xf32>
    %128 = arith.mulf %127, %123 : vector<32x64xf32>
    %129 = arith.mulf %128, %123 : vector<32x64xf32>
    %130 = arith.addf %123, %129 : vector<32x64xf32>
    %cst_98 = arith.constant 0.797884583 : f32
    %131 = vector.broadcast %cst_98 : f32 to vector<32x64xf32>
    %132 = arith.mulf %131, %130 : vector<32x64xf32>
    %133 = math.tanh %132 : vector<32x64xf32>
    %cst_99 = arith.constant 1.000000e+00 : f32
    %134 = vector.broadcast %cst_99 : f32 to vector<32x64xf32>
    %135 = arith.addf %134, %133 : vector<32x64xf32>
    %136 = arith.mulf %125, %135 : vector<32x64xf32>
    %c1_100 = arith.constant 1 : index
    %c1_101 = arith.constant 1 : index
    %c0_102 = arith.constant 0 : index
    %c0_103 = arith.constant 0 : index
    %137 = vector.load %arg3[%c1_100, %c1_101, %c0_102, %c0_103] : memref<2x4x32x32xbf16, #tpu.memory_space<vmem>>, vector<1x1x32x32xbf16>
    %138 = vector.shape_cast %137 : vector<1x1x32x32xbf16> to vector<32x32xbf16>
    %139 = arith.truncf %136 : vector<32x64xf32> to vector<32x64xbf16>
    %cst_104 = arith.constant dense<0.000000e+00> : vector<32x64xf32>
    %140 = tpu.matmul %138, %139, %cst_104 {dimension_numbers = #tpu.dot_dimension_numbers<[1], [0], [0], [1], [0, 0, 1, 1], [], []>} : vector<32x32xbf16>, vector<32x64xbf16>, vector<32x64xf32> -> vector<32x64xf32>
    %c17 = arith.constant 17 : index
    %c0_105 = arith.constant 0 : index
    %c0_106 = arith.constant 0 : index
    %141 = vector.load %arg4[%c17, %c0_105, %c0_106] : memref<23x32x64xf32, #tpu.memory_space<vmem>>, vector<1x32x64xf32>
    %142 = vector.shape_cast %141 : vector<1x32x64xf32> to vector<32x64xf32>
    %143 = arith.addf %140, %142 : vector<32x64xf32>
    %c1_107 = arith.constant 1 : index
    %c2_108 = arith.constant 2 : index
    %c0_109 = arith.constant 0 : index
    %c0_110 = arith.constant 0 : index
    %144 = vector.load %arg3[%c1_107, %c2_108, %c0_109, %c0_110] : memref<2x4x32x32xbf16, #tpu.memory_space<vmem>>, vector<1x1x32x32xbf16>
    %145 = vector.shape_cast %144 : vector<1x1x32x32xbf16> to vector<32x32xbf16>
    %146 = arith.truncf %143 : vector<32x64xf32> to vector<32x64xbf16>
    %cst_111 = arith.constant dense<0.000000e+00> : vector<32x64xf32>
    %147 = tpu.matmul %145, %146, %cst_111 {dimension_numbers = #tpu.dot_dimension_numbers<[1], [0], [0], [1], [0, 0, 1, 1], [], []>} : vector<32x32xbf16>, vector<32x64xbf16>, vector<32x64xf32> -> vector<32x64xf32>
    %c18 = arith.constant 18 : index
    %c0_112 = arith.constant 0 : index
    %c0_113 = arith.constant 0 : index
    %148 = vector.load %arg4[%c18, %c0_112, %c0_113] : memref<23x32x64xf32, #tpu.memory_space<vmem>>, vector<1x32x64xf32>
    %149 = vector.shape_cast %148 : vector<1x32x64xf32> to vector<32x64xf32>
    %150 = arith.addf %147, %149 : vector<32x64xf32>
    %cst_114 = arith.constant 5.000000e-01 : f32
    %151 = vector.broadcast %cst_114 : f32 to vector<32x64xf32>
    %152 = arith.mulf %151, %150 : vector<32x64xf32>
    %cst_115 = arith.constant 4.471500e-02 : f32
    %153 = vector.broadcast %cst_115 : f32 to vector<32x64xf32>
    %154 = arith.mulf %153, %150 : vector<32x64xf32>
    %155 = arith.mulf %154, %150 : vector<32x64xf32>
    %156 = arith.mulf %155, %150 : vector<32x64xf32>
    %157 = arith.addf %150, %156 : vector<32x64xf32>
    %cst_116 = arith.constant 0.797884583 : f32
    %158 = vector.broadcast %cst_116 : f32 to vector<32x64xf32>
    %159 = arith.mulf %158, %157 : vector<32x64xf32>
    %160 = math.tanh %159 : vector<32x64xf32>
    %cst_117 = arith.constant 1.000000e+00 : f32
    %161 = vector.broadcast %cst_117 : f32 to vector<32x64xf32>
    %162 = arith.addf %161, %160 : vector<32x64xf32>
    %163 = arith.mulf %152, %162 : vector<32x64xf32>
    %c1_118 = arith.constant 1 : index
    %c3_119 = arith.constant 3 : index
    %c0_120 = arith.constant 0 : index
    %c0_121 = arith.constant 0 : index
    %164 = vector.load %arg3[%c1_118, %c3_119, %c0_120, %c0_121] : memref<2x4x32x32xbf16, #tpu.memory_space<vmem>>, vector<1x1x32x32xbf16>
    %165 = vector.shape_cast %164 : vector<1x1x32x32xbf16> to vector<32x32xbf16>
    %166 = arith.truncf %163 : vector<32x64xf32> to vector<32x64xbf16>
    %cst_122 = arith.constant dense<0.000000e+00> : vector<32x64xf32>
    %167 = tpu.matmul %165, %166, %cst_122 {dimension_numbers = #tpu.dot_dimension_numbers<[1], [0], [0], [1], [0, 0, 1, 1], [], []>} : vector<32x32xbf16>, vector<32x64xbf16>, vector<32x64xf32> -> vector<32x64xf32>
    %c19 = arith.constant 19 : index
    %c0_123 = arith.constant 0 : index
    %c0_124 = arith.constant 0 : index
    %168 = vector.load %arg4[%c19, %c0_123, %c0_124] : memref<23x32x64xf32, #tpu.memory_space<vmem>>, vector<1x32x64xf32>
    %169 = vector.shape_cast %168 : vector<1x32x64xf32> to vector<32x64xf32>
    %170 = arith.addf %167, %169 : vector<32x64xf32>
    %171 = arith.addf %89, %170 : vector<32x64xf32>
    %172 = arith.mulf %171, %171 : vector<32x64xf32>
    %173 = tpu.concatenate %171, %172 in 0 : vector<32x64xf32>, vector<32x64xf32> -> vector<64x64xf32>
    %c0_125 = arith.constant 0 : index
    %c0_126 = arith.constant 0 : index
    %174 = vector.load %arg5[%c0_125, %c0_126] : memref<64x64xf32, #tpu.memory_space<vmem>>, vector<64x64xf32>
    %cst_127 = arith.constant dense<0.000000e+00> : vector<64x64xf32>
    %175 = tpu.matmul %173, %174, %cst_127 {dimension_numbers = #tpu.dot_dimension_numbers<[1], [0], [0], [1], [0, 0, 1, 1], [], []>} : vector<64x64xf32>, vector<64x64xf32>, vector<64x64xf32> -> vector<64x64xf32>
    %176 = vector.extract_strided_slice %175 {offsets = [0, 0], sizes = [32, 64], strides = [1, 1]} : vector<64x64xf32> to vector<32x64xf32>
    %177 = vector.extract_strided_slice %175 {offsets = [32, 0], sizes = [32, 64], strides = [1, 1]} : vector<64x64xf32> to vector<32x64xf32>
    %178 = arith.mulf %176, %176 : vector<32x64xf32>
    %179 = arith.subf %177, %178 : vector<32x64xf32>
    %180 = arith.subf %171, %176 : vector<32x64xf32>
    %cst_128 = arith.constant 9.99999974E-6 : f32
    %181 = vector.broadcast %cst_128 : f32 to vector<32x64xf32>
    %182 = arith.addf %179, %181 : vector<32x64xf32>
    %183 = math.rsqrt %182 : vector<32x64xf32>
    %184 = arith.mulf %180, %183 : vector<32x64xf32>
    %c21 = arith.constant 21 : index
    %c0_129 = arith.constant 0 : index
    %c0_130 = arith.constant 0 : index
    %185 = vector.load %arg4[%c21, %c0_129, %c0_130] : memref<23x32x64xf32, #tpu.memory_space<vmem>>, vector<1x32x64xf32>
    %186 = vector.shape_cast %185 : vector<1x32x64xf32> to vector<32x64xf32>
    %187 = arith.mulf %184, %186 : vector<32x64xf32>
    %c22 = arith.constant 22 : index
    %c0_131 = arith.constant 0 : index
    %c0_132 = arith.constant 0 : index
    %188 = vector.load %arg4[%c22, %c0_131, %c0_132] : memref<23x32x64xf32, #tpu.memory_space<vmem>>, vector<1x32x64xf32>
    %189 = vector.shape_cast %188 : vector<1x32x64xf32> to vector<32x64xf32>
    %190 = arith.addf %187, %189 : vector<32x64xf32>
    %c0_133 = arith.constant 0 : index
    %c0_134 = arith.constant 0 : index
    %191 = vector.load %arg6[%c0_133, %c0_134] : memref<32x64xf32, #tpu.memory_space<vmem>>, vector<32x64xf32>
    tpu.vector_store %arg6[%c0_133, %c0_134], %190 {strides = array<i32>} : memref<32x64xf32, #tpu.memory_space<vmem>>, vector<32x64xf32>,
    return
  }
  func.func @transform_0(%arg0: i32) -> (i32, i32) {
    %c0_i32 = arith.constant 0 : i32
    %c0_i32_0 = arith.constant 0 : i32
    %c0_i32_1 = arith.constant 0 : i32
    return %c0_i32, %c0_i32_0 : i32, i32
  }
  func.func @transform_1(%arg0: i32) -> (i32, i32) {
    %c0_i32 = arith.constant 0 : i32
    %c0_i32_0 = arith.constant 0 : i32
    %c0_i32_1 = arith.constant 0 : i32
    return %c0_i32, %c0_i32_0 : i32, i32
  }
  func.func @transform_2(%arg0: i32) -> (i32, i32, i32, i32) {
    %c0_i32 = arith.constant 0 : i32
    %c0_i32_0 = arith.constant 0 : i32
    %c0_i32_1 = arith.constant 0 : i32
    %c0_i32_2 = arith.constant 0 : i32
    %c0_i32_3 = arith.constant 0 : i32
    return %c0_i32, %c0_i32_0, %c0_i32_1, %c0_i32_2 : i32, i32, i32, i32
  }
  func.func @transform_3(%arg0: i32) -> (i32, i32, i32) {
    %c0_i32 = arith.constant 0 : i32
    %c0_i32_0 = arith.constant 0 : i32
    %c0_i32_1 = arith.constant 0 : i32
    %c0_i32_2 = arith.constant 0 : i32
    return %c0_i32, %c0_i32_0, %c0_i32_1 : i32, i32, i32
  }
  func.func @transform_4(%arg0: i32) -> (i32, i32) {
    %c0_i32 = arith.constant 0 : i32
    %c0_i32_0 = arith.constant 0 : i32
    %c0_i32_1 = arith.constant 0 : i32
    return %c0_i32, %c0_i32_0 : i32, i32
  }
  func.func @transform_5(%arg0: i32) -> (i32, i32) {
    %c0_i32 = arith.constant 0 : i32
    %c0_i32_0 = arith.constant 0 : i32
    %c0_i32_1 = arith.constant 0 : i32
    return %c0_i32, %c0_i32_0 : i32, i32
  }
}

</mosaic_0001>

<bundles_post_ra>
// kernel: mscn_forward.1
= control target key start
LH: loop header
LB: loop body
LE: loop exit
PB: predicated region body
PF: predicated region fallthrough
CT: control target
= control target key end

     0   :  { %10 = vsyncpa [#allocation4], 0  ;;  %s1281_s21 = smov [#allocation3]   ;;  %s1282_s23 = smov 128   ;;  %s1551_s0 = inlined_call_operand.vmem [shape: bf16[32,16], index: 0, kind: input, shape index: {}]   ;;  %s1552_s1 = inlined_call_operand.vmem [shape: bf16[16,64], index: 1, kind: input, shape index: {}]   ;;  %s1553_s2 = inlined_call_operand.vmem [shape: bf16[2,4,32,32], index: 2, kind: input, shape index: {}]   ;;  %s1554_s3 = inlined_call_operand.hbm [shape: f32[23,32,64], index: 3, kind: input, shape index: {}]   ;;  %s1555_s4 = inlined_call_operand.vmem [shape: f32[64,64], index: 4, kind: input, shape index: {}]   ;;  %s1556_s5 = inlined_call_operand.vmem [shape: f32[32,64], index: 5, kind: output, shape index: {}]  }
   0x1   :  { %s21_s20 = sshll.u32 %s1554_s3, 4  ;;  %s23_s22 = sshll.u32 %s1281_s21, 4  ;;  %s22_s20 = int_to_ptr.hbm [resolvable:$true] %s21_s20  ;;  %s24_s22 = int_to_ptr.vmem [resolvable:$true] %s23_s22 }
   0x2   :  { %s1283_s24 = smov 8  }
   0x3   :  { %29 = dma.hbm_to_vmem [thread:$0]  %s22_s20, 11776, %s24_s22, [#allocation4], %s1282_s23, %s1282_s23, %s1283_s24  }
   0x4   :  { %1279 = dma.done.wait [#allocation4], 11776  }
   0x5   :  { %1280 = vsyncadd [#allocation4], 4294955520  ;;  %v1188_v0 = vld [vmem:[%s1552_s1] sm:$0xff]  ;;  %vm69_vm0 = vcmask 130048   ;;  %v1187_v2 = vld [vmem:[%s1551_s0 + $0x8] sm:$0xff]  ;;  %vm37_vm1 = vcmask 556032  }
   0x6   :  { %v1186_v1 = vld [vmem:[%s1551_s0] sm:$0xff]  ;;  %83 = vmatpush.bf16.msra.mxu0 %v1188_v0  ;;  %v1284_v3 = vmov 0.0   ;;  %s1285_s1 = smov 2   ;;  %v50_v7 = vld [vmem:[#allocation3 + $0x288] sm:$0xff]  ;;  %v51_v10 = vld [vmem:[#allocation3 + $0x290] sm:$0xff]  ;;  %vm111_vm2 = vcmask 539664  }
   0x7   :  { %38 = vst.msk [vmem:[#allocation2] sm:$0xff] %vm37_vm1, %v1284_v3  ;;  %v49_v4 = vld [vmem:[#allocation3 + $0x280] sm:$0xff]  ;;  %v52_v13 = vld [vmem:[#allocation3 + $0x298] sm:$0xff]  ;;  %s1286_s0 = smov 125   ;;  %s1287_s30 = smov 127   ;;  %v127_v29 = vld [vmem:[#allocation3 + $0x10] sm:$0xff] }
   0x8   :  { %39 = vst.msk [vmem:[#allocation2 + $0x8] sm:$0xff] %vm37_vm1, %v1284_v3  ;;  %s1288_s6 = smov 124   ;;  %v119_v30 = vld [vmem:[#allocation3 + $0x50] sm:$0xff]  ;;  %v128_v33 = vld [vmem:[#allocation3 + $0x18] sm:$0xff]  ;;  %v125_v48 = vld [vmem:[#allocation3] sm:$0xff]  ;;  %vm250_vm3 = vcmask 261120  }
   0x9   :  { %1068 = vmatmul.msk.bf16.vlgmr.msra.gmra.mxu0 %vm69_vm0, %v1186_v1  ;;  %40 = vst.msk [vmem:[#allocation2 + $0x10] sm:$0xff] %vm37_vm1, %v1284_v3  ;;  %v144_v31 = vld [vmem:[#allocation3 + $0x30] sm:$0xff]  ;;  %v120_v39 = vld [vmem:[#allocation3 + $0x58] sm:$0xff]  ;;  %v117_v51 = vld [vmem:[#allocation3 + $0x40] sm:$0xff]  ;;  %vm903_vm4 = vcmask 523264  }
   0xa   :  { %41 = vst.msk [vmem:[#allocation2 + $0x18] sm:$0xff] %vm37_vm1, %v1284_v3  ;;  %v173_v35 = vld [vmem:[#allocation3 + $0x70] sm:$0xff]  ;;  %v145_v40 = vld [vmem:[#allocation3 + $0x38] sm:$0xff]  ;;  %v126_v53 = vld [vmem:[#allocation3 + $0x8] sm:$0xff] }
   0xb   :  { %v198_v49 = vld [vmem:[#allocation3 + $0x90] sm:$0xff]  ;;  %v174_v50 = vld [vmem:[#allocation3 + $0x78] sm:$0xff]  ;;  %v142_v55 = vld [vmem:[#allocation3 + $0x20] sm:$0xff] }
   0xc   :  { %v199_v56 = vld [vmem:[#allocation3 + $0x98] sm:$0xff]  ;;  %v118_v58 = vld [vmem:[#allocation3 + $0x48] sm:$0xff]  ;;  %v171_v0 = vld [vmem:[#allocation3 + $0x60] sm:$0xff] }
  0x19   :  { %1069 = vmatmul.msk.bf16.gmra.mxu0 %vm69_vm0, %v1187_v2  ;;  %v143_v2 = vld [vmem:[#allocation3 + $0x28] sm:$0xff] }
  0x86   :  { %v85_v5 = vpop.f32.mrf.mxu0 }
  0x87   :  { %v1331_v6 = vadd.f32 %v85_v5, %v49_v4 }
  0x89   :  { %99 = vrot.lane.b32.xlu1 %v1331_v6, %s1285_s1  ;;  %v121_v63 = vmul.f32 %v117_v51, %v1331_v6 }
  0x8e   :  { %v87_v8 = vpop.f32.mrf.mxu0 }
  0x8f   :  { %v1335_v9 = vadd.f32 %v87_v8, %v50_v7 }
  0x91   :  { %101 = vrot.lane.b32.xlu1 %v1335_v9, %s1285_s1  ;;  %v122_v8 = vmul.f32 %v118_v58, %v1335_v9 }
  0x96   :  { %v90_v11 = vpop.f32.mrf.mxu0 }
  0x97   :  { %v1339_v12 = vadd.f32 %v90_v11, %v51_v10  ;;  %v196_v10 = vld [vmem:[#allocation3 + $0x80] sm:$0xff] }
  0x99   :  { %103 = vrot.lane.b32.xlu0 %v1339_v12, %s1285_s1  ;;  %v123_v37 = vmul.f32 %v119_v30, %v1339_v12 }
  0x9e   :  { %v92_v14 = vpop.f32.mrf.mxu0 }
  0x9f   :  { %v1343_v15 = vadd.f32 %v92_v14, %v52_v13  ;;  %v223_v13 = vld [vmem:[#allocation3 + $0xb0] sm:$0xff]  ;;  %v224_v14 = vld [vmem:[#allocation3 + $0xb8] sm:$0xff] }
  0xa1   :  { %105 = vrot.lane.b32.xlu0 %v1343_v15, %s1285_s1  ;;  %v124_v45 = vmul.f32 %v120_v39, %v1343_v15 }
  0xfb   :  { %v100_v16 = vpop.permute.xlu1 %99 }
  0xfc   :  { %112 = vst.msk [vmem:[#allocation2] sm:$0xff] %vm111_vm2, %v100_v16 }
 0x103   :  { %v102_v17 = vpop.permute.xlu1 %101  ;;  %v129_v18 = vld [vmem:[#allocation2] sm:$0xff] }
 0x104   :  { %113 = vst.msk [vmem:[#allocation2 + $0x8] sm:$0xff] %vm111_vm2, %v102_v17  ;;  %175 = vrot.lane.b32.xlu0 %v129_v18, %s1286_s0  ;;  %150 = vrot.lane.b32.xlu2 %v129_v18, %s1287_s30  ;;  %v133_v59 = vmul.f32 %v129_v18, %v125_v48 }
 0x106   :  { %v137_v16 = vadd.f32 %v133_v59, %v121_v63  ;;  %v239_v59 = vld [vmem:[#allocation3 + $0xd8] sm:$0xff] }
 0x10b   :  { %v104_v19 = vpop.permute.xlu0 %103  ;;  %v130_v20 = vld [vmem:[#allocation2 + $0x8] sm:$0xff] }
 0x10c   :  { %114 = vst.msk [vmem:[#allocation2 + $0x10] sm:$0xff] %vm111_vm2, %v104_v19  ;;  %152 = vrot.lane.b32.xlu0 %v130_v20, %s1287_s30  ;;  %v134_v1 = vmul.f32 %v130_v20, %v126_v53 }
 0x113   :  { %v106_v21 = vpop.permute.xlu0 %105  ;;  %v131_v22 = vld [vmem:[#allocation2 + $0x10] sm:$0xff] }
 0x114   :  { %115 = vst.msk [vmem:[#allocation2 + $0x18] sm:$0xff] %vm111_vm2, %v106_v21  ;;  %204 = vrot.lane.b32.xlu1 %v131_v22, %s1288_s6  ;;  %179 = vrot.lane.b32.xlu0 %v131_v22, %s1286_s0  ;;  %v135_v32 = vmul.f32 %v131_v22, %v127_v29  ;;  %v138_v21 = vadd.f32 %v134_v1, %v122_v8 }
 0x115   :  { %154 = vrot.lane.b32.xlu2 %v131_v22, %s1287_s30  ;;  %v172_v22 = vld [vmem:[#allocation3 + $0x68] sm:$0xff] }
 0x116   :  { %v139_v42 = vadd.f32 %v135_v32, %v123_v37 }
 0x11b   :  { %v132_v23 = vld [vmem:[#allocation2 + $0x18] sm:$0xff] }
 0x11c   :  { %181 = vrot.lane.b32.xlu1 %v132_v23, %s1286_s0  ;;  %202 = vrot.lane.b32.xlu0 %v130_v20, %s1288_s6  ;;  %v136_v43 = vmul.f32 %v132_v23, %v128_v33 }
 0x11d   :  { %156 = vrot.lane.b32.xlu2 %v132_v23, %s1287_s30 }
 0x11e   :  { %v140_v52 = vadd.f32 %v136_v43, %v124_v45  ;;  %v1190_v43 = vld [vmem:[%s1553_s2 + $0x8] sm:$0xff] }
 0x11f   :  { %v237_v45 = vld [vmem:[#allocation3 + $0xc8] sm:$0xff] }
 0x124   :  { %177 = vrot.lane.b32.xlu1 %v130_v20, %s1286_s0 }
 0x125   :  { %206 = vrot.lane.b32.xlu2 %v132_v23, %s1288_s6 }
 0x12d   :  { %200 = vrot.lane.b32.xlu2 %v129_v18, %s1288_s6 }
 0x15e   :  { %v151_v24 = vpop.permute.xlu2 %150 }
 0x15f   :  { %v162_v3 = vmul.f32 %v151_v24, %v142_v55  ;;  %v197_v24 = vld [vmem:[#allocation3 + $0x88] sm:$0xff] }
 0x161   :  { %v166_v23 = vadd.f32 %v162_v3, %v137_v16 }
 0x16f   :  { %v155_v25 = vpop.permute.xlu2 %154 }
 0x170   :  { %v164_v38 = vmul.f32 %v155_v25, %v144_v31 }
 0x172   :  { %v168_v46 = vadd.f32 %v164_v38, %v139_v42  ;;  %v1189_v42 = vld [vmem:[%s1553_s2] sm:$0xff] }
 0x176   :  { %v176_v26 = vpop.permute.xlu0 %175 }
 0x177   :  { %v157_v27 = vpop.permute.xlu2 %156  ;;  %v187_v17 = vmul.f32 %v176_v26, %v171_v0  ;;  %v221_v26 = vld [vmem:[#allocation3 + $0xa0] sm:$0xff] }
 0x178   :  { %v165_v47 = vmul.f32 %v157_v27, %v145_v40 }
 0x179   :  { %v191_v31 = vadd.f32 %v187_v17, %v166_v23 }
 0x17a   :  { %v169_v60 = vadd.f32 %v165_v47, %v140_v52  ;;  %v236_v47 = vld [vmem:[#allocation3 + $0xc0] sm:$0xff] }
 0x17e   :  { %v153_v28 = vpop.permute.xlu0 %152 }
 0x17f   :  { %v207_v41 = vpop.permute.xlu2 %206  ;;  %v163_v18 = vmul.f32 %v153_v28, %v143_v2  ;;  %v222_v28 = vld [vmem:[#allocation3 + $0xa8] sm:$0xff] }
 0x180   :  { %v215_v4 = vmul.f32 %v207_v41, %v199_v56 }
 0x181   :  { %v167_v32 = vadd.f32 %v163_v18, %v138_v21 }
 0x186   :  { %v205_v34 = vpop.permute.xlu1 %204  ;;  %v180_v36 = vpop.permute.xlu0 %179 }
 0x187   :  { %v189_v44 = vmul.f32 %v180_v36, %v173_v35  ;;  %v214_v61 = vmul.f32 %v205_v34, %v198_v49  ;;  %v201_v11 = vpop.permute.xlu2 %200 }
 0x188   :  { %v212_v25 = vmul.f32 %v201_v11, %v196_v10 }
 0x189   :  { %v193_v54 = vadd.f32 %v189_v44, %v168_v46 }
 0x18a   :  { %v216_v35 = vadd.f32 %v212_v25, %v191_v31 }
 0x18b   :  { %v218_v7 = vadd.f32 %v214_v61, %v193_v54 }
 0x18c   :  { %v225_v39 = vadd.f32 %v221_v26, %v216_v35 }
 0x18d   :  { %v227_v20 = vadd.f32 %v223_v13, %v218_v7 }
 0x18e   :  { %v182_v57 = vpop.permute.xlu1 %181  ;;  %v203_v29 = vpop.permute.xlu0 %202 }
 0x18f   :  { %v190_v62 = vmul.f32 %v182_v57, %v174_v50  ;;  %v213_v36 = vmul.f32 %v203_v29, %v197_v24  ;;  %v238_v50 = vld [vmem:[#allocation3 + $0xd0] sm:$0xff] }
 0x191   :  { %v194_v5 = vadd.f32 %v190_v62, %v169_v60 }
 0x193   :  { %v219_v19 = vadd.f32 %v215_v4, %v194_v5 }
 0x195   :  { %v228_v27 = vadd.f32 %v224_v14, %v219_v19 }
 0x196   :  { %v178_v30 = vpop.permute.xlu1 %177 }
 0x197   :  { %v188_v33 = vmul.f32 %v178_v30, %v172_v22  ;;  %v234_v34 = vpack.c.bf16 %v228_v27, %v227_v20 }
 0x199   :  { %v192_v37 = vadd.f32 %v188_v33, %v167_v32  ;;  %263 = vmatpush.bf16.msra.mxu2 %v234_v34 }
 0x19b   :  { %v217_v38 = vadd.f32 %v213_v36, %v192_v37  ;;  %v1191_v36 = vld [vmem:[%s1553_s2 + $0x10] sm:$0xff]  ;;  %v1192_v37 = vld [vmem:[%s1553_s2 + $0x18] sm:$0xff] }
 0x19d   :  { %v226_v40 = vadd.f32 %v222_v28, %v217_v38 }
 0x19f   :  { %v233_v41 = vpack.c.bf16 %v226_v40, %v225_v39  ;;  %v322_v39 = vld [vmem:[#allocation3 + $0xf0] sm:$0xff]  ;;  %v323_v40 = vld [vmem:[#allocation3 + $0xf8] sm:$0xff] }
 0x1a1   :  { %264 = vmatpush.bf16.msra.mxu2 %v233_v41  ;;  %v321_v41 = vld [vmem:[#allocation3 + $0xe8] sm:$0xff] }
 0x1a4   :  { %1078 = vmatmul.msk.bf16.vlgmr.msra.gmra.mxu2 %vm250_vm3, %v1189_v42 }
 0x1b4   :  { %1079 = vmatmul.msk.bf16.gmra.mxu2 %vm250_vm3, %v1190_v43 }
 0x227   :  { %v266_v44 = vpop.f32.mrf.mxu2 }
 0x228   :  { %v267_v49 = vadd.f32 %v266_v44, %v236_v47 }
 0x22a   :  { %v280_v52 = vmul.f32 0.044715, %v267_v49  ;;  %v276_v32 = vmul.f32 0.5, %v267_v49 }
 0x22c   :  { %v284_v57 = vmul.f32 %v280_v52, %v267_v49 }
 0x22e   :  { %v288_v63 = vmul.f32 %v284_v57, %v267_v49 }
 0x22f   :  { %v268_v46 = vpop.f32.mrf.mxu2 }
 0x230   :  { %v269_v48 = vadd.f32 %v268_v46, %v237_v45  ;;  %v292_v4 = vadd.f32 %v288_v63, %v267_v49  ;;  %v320_v45 = vld [vmem:[#allocation3 + $0xe0] sm:$0xff] }
 0x232   :  { %v281_v51 = vmul.f32 0.044715, %v269_v48  ;;  %v296_v11 = vmul.f32 0.7978846, %v292_v4  ;;  %v277_v29 = vmul.f32 0.5, %v269_v48 }
 0x234   :  { %v285_v56 = vmul.f32 %v281_v51, %v269_v48  ;;  %v1194_v51 = vld [vmem:[%s1553_s2 + $0x28] sm:$0xff] }
 0x236   :  { %v289_v61 = vmul.f32 %v285_v56, %v269_v48 }
 0x237   :  { %v271_v53 = vpop.f32.mrf.mxu2 }
 0x238   :  { %v272_v54 = vadd.f32 %v271_v53, %v238_v50  ;;  %v293_v3 = vadd.f32 %v289_v61, %v269_v48  ;;  %v1193_v50 = vld [vmem:[%s1553_s2 + $0x20] sm:$0xff]  ;;  %v368_v53 = vld [vmem:[#allocation3 + $0x108] sm:$0xff] }
 0x23a   :  { %v282_v55 = vmul.f32 0.044715, %v272_v54  ;;  %v297_v10 = vmul.f32 0.7978846, %v293_v3  ;;  %v278_v22 = vmul.f32 0.5, %v272_v54  ;;  %v370_v3 = vld [vmem:[#allocation3 + $0x118] sm:$0xff] }
 0x23c   :  { %v286_v58 = vmul.f32 %v282_v55, %v272_v54  ;;  %v367_v55 = vld [vmem:[#allocation3 + $0x100] sm:$0xff] }
 0x23e   :  { %v290_v60 = vmul.f32 %v286_v58, %v272_v54  ;;  %v369_v58 = vld [vmem:[#allocation3 + $0x110] sm:$0xff] }
 0x23f   :  { %v273_v62 = vpop.f32.mrf.mxu2 }
 0x240   :  { %v274_v0 = vadd.f32 %v273_v62, %v239_v59  ;;  %v294_v1 = vadd.f32 %v290_v60, %v272_v54 }
 0x242   :  { %v283_v2 = vmul.f32 0.044715, %v274_v0  ;;  %v298_v7 = vmul.f32 0.7978846, %v294_v1  ;;  %v279_v23 = vmul.f32 0.5, %v274_v0 }
 0x244   :  { %v287_v5 = vmul.f32 %v283_v2, %v274_v0  ;;  %1215 = vtanh.f32 %v298_v7 }
 0x245   :  { %1217 = vtanh.f32 %v297_v10 }
 0x246   :  { %v291_v8 = vmul.f32 %v287_v5, %v274_v0  ;;  %1219 = vtanh.f32 %v296_v11 }
 0x248   :  { %v295_v13 = vadd.f32 %v291_v8, %v274_v0 }
 0x24a   :  { %v299_v14 = vmul.f32 0.7978846, %v295_v13  ;;  %v1216_v16 = vpop.eup %1215 }
 0x24b   :  { %v1218_v17 = vpop.eup %1217  ;;  %v306_v19 = vadd.f32 1.0, %v1216_v16 }
 0x24c   :  { %1221 = vtanh.f32 %v299_v14  ;;  %v1220_v18 = vpop.eup %1219  ;;  %v305_v20 = vadd.f32 1.0, %v1218_v17 }
 0x24d   :  { %v310_v27 = vmul.f32 %v306_v19, %v278_v22  ;;  %v304_v30 = vadd.f32 1.0, %v1220_v18 }
 0x24e   :  { %v309_v33 = vmul.f32 %v305_v20, %v277_v29 }
 0x24f   :  { %v308_v34 = vmul.f32 %v304_v30, %v276_v32 }
 0x251   :  { %v317_v35 = vpack.c.bf16 %v309_v33, %v308_v34 }
 0x252   :  { %v1222_v21 = vpop.eup %1221 }
 0x253   :  { %v307_v25 = vadd.f32 1.0, %v1222_v21 }
 0x255   :  { %v311_v24 = vmul.f32 %v307_v25, %v279_v23 }
 0x257   :  { %v318_v31 = vpack.c.bf16 %v311_v24, %v310_v27 }
 0x259   :  { %346 = vmatpush.bf16.msrb.mxu2 %v318_v31 }
 0x25d   :  { %347 = vmatpush.bf16.msrb.mxu2 %v317_v35 }
 0x260   :  { %1092 = vmatmul.msk.bf16.vlgmr.msrb.gmra.mxu2 %vm250_vm3, %v1191_v36 }
 0x270   :  { %1093 = vmatmul.msk.bf16.gmra.mxu2 %vm250_vm3, %v1192_v37 }
 0x2e3   :  { %v349_v26 = vpop.f32.mrf.mxu2 }
 0x2e4   :  { %v350_v48 = vadd.f32 %v349_v26, %v320_v45 }
 0x2eb   :  { %v351_v28 = vpop.f32.mrf.mxu2 }
 0x2ec   :  { %v352_v46 = vadd.f32 %v351_v28, %v321_v41 }
 0x2ee   :  { %v364_v49 = vpack.c.bf16 %v352_v46, %v350_v48 }
 0x2f3   :  { %v354_v38 = vpop.f32.mrf.mxu2 }
 0x2f4   :  { %v355_v43 = vadd.f32 %v354_v38, %v322_v39 }
 0x2fb   :  { %v356_v42 = vpop.f32.mrf.mxu2 }
 0x2fc   :  { %v357_v44 = vadd.f32 %v356_v42, %v323_v40  ;;  %v1195_v42 = vld [vmem:[%s1553_s2 + $0x30] sm:$0xff] }
 0x2fe   :  { %v365_v47 = vpack.c.bf16 %v357_v44, %v355_v43  ;;  %v1196_v43 = vld [vmem:[%s1553_s2 + $0x38] sm:$0xff]  ;;  %v450_v44 = vld [vmem:[#allocation3 + $0x120] sm:$0xff] }
 0x300   :  { %393 = vmatpush.bf16.msra.mxu3 %v365_v47 }
 0x304   :  { %394 = vmatpush.bf16.msra.mxu3 %v364_v49  ;;  %v452_v49 = vld [vmem:[#allocation3 + $0x130] sm:$0xff] }
 0x307   :  { %1106 = vmatmul.msk.bf16.vlgmr.msra.gmra.mxu3 %vm250_vm3, %v1193_v50 }
 0x317   :  { %1107 = vmatmul.msk.bf16.gmra.mxu3 %vm250_vm3, %v1194_v51 }
 0x38a   :  { %v396_v52 = vpop.f32.mrf.mxu3 }
 0x38b   :  { %v397_v57 = vadd.f32 %v396_v52, %v367_v55 }
 0x38d   :  { %v410_v60 = vmul.f32 0.044715, %v397_v57  ;;  %v406_v38 = vmul.f32 0.5, %v397_v57 }
 0x38f   :  { %v414_v1 = vmul.f32 %v410_v60, %v397_v57 }
 0x391   :  { %v418_v8 = vmul.f32 %v414_v1, %v397_v57 }
 0x392   :  { %v398_v54 = vpop.f32.mrf.mxu3 }
 0x393   :  { %v399_v56 = vadd.f32 %v398_v54, %v368_v53  ;;  %v422_v16 = vadd.f32 %v418_v8, %v397_v57  ;;  %v451_v53 = vld [vmem:[#allocation3 + $0x128] sm:$0xff]  ;;  %v453_v54 = vld [vmem:[#allocation3 + $0x138] sm:$0xff] }
 0x394   :  { %v543_v8 = vld [vmem:[#allocation3 + $0x178] sm:$0xff] }
 0x395   :  { %v411_v59 = vmul.f32 0.044715, %v399_v56  ;;  %v426_v22 = vmul.f32 0.7978846, %v422_v16  ;;  %v407_v37 = vmul.f32 0.5, %v399_v56  ;;  %v523_v16 = vld [vmem:[#allocation3 + $0x140] sm:$0xff] }
 0x397   :  { %v415_v0 = vmul.f32 %v411_v59, %v399_v56 }
 0x399   :  { %v419_v5 = vmul.f32 %v415_v0, %v399_v56 }
 0x39a   :  { %v401_v61 = vpop.f32.mrf.mxu3 }
 0x39b   :  { %v402_v62 = vadd.f32 %v401_v61, %v369_v58  ;;  %v423_v14 = vadd.f32 %v419_v5, %v399_v56  ;;  %v526_v5 = vld [vmem:[#allocation3 + $0x158] sm:$0xff] }
 0x39d   :  { %v412_v63 = vmul.f32 0.044715, %v402_v62  ;;  %v427_v21 = vmul.f32 0.7978846, %v423_v14  ;;  %v408_v31 = vmul.f32 0.5, %v402_v62 }
 0x39f   :  { %v416_v2 = vmul.f32 %v412_v63, %v402_v62 }
 0x3a1   :  { %v420_v4 = vmul.f32 %v416_v2, %v402_v62 }
 0x3a2   :  { %v403_v7 = vpop.f32.mrf.mxu3 }
 0x3a3   :  { %v404_v10 = vadd.f32 %v403_v7, %v370_v3  ;;  %v424_v11 = vadd.f32 %v420_v4, %v402_v62  ;;  %v517_v7 = vld [vmem:[#allocation3 + $0x198] sm:$0xff] }
 0x3a5   :  { %v413_v13 = vmul.f32 0.044715, %v404_v10  ;;  %v428_v18 = vmul.f32 0.7978846, %v424_v11  ;;  %v409_v32 = vmul.f32 0.5, %v404_v10  ;;  %v525_v11 = vld [vmem:[#allocation3 + $0x150] sm:$0xff] }
 0x3a7   :  { %v417_v17 = vmul.f32 %v413_v13, %v404_v10  ;;  %1223 = vtanh.f32 %v428_v18 }
 0x3a8   :  { %1225 = vtanh.f32 %v427_v21  ;;  %v542_v21 = vld [vmem:[#allocation3 + $0x170] sm:$0xff] }
 0x3a9   :  { %v421_v19 = vmul.f32 %v417_v17, %v404_v10  ;;  %1227 = vtanh.f32 %v426_v22 }
 0x3ab   :  { %v425_v23 = vadd.f32 %v421_v19, %v404_v10  ;;  %v516_v19 = vld [vmem:[#allocation3 + $0x190] sm:$0xff] }
 0x3ad   :  { %v429_v25 = vmul.f32 0.7978846, %v425_v23  ;;  %v1224_v20 = vpop.eup %1223 }
 0x3ae   :  { %v1226_v27 = vpop.eup %1225  ;;  %v436_v29 = vadd.f32 1.0, %v1224_v20 }
 0x3af   :  { %1229 = vtanh.f32 %v429_v25  ;;  %v1228_v24 = vpop.eup %1227  ;;  %v435_v34 = vadd.f32 1.0, %v1226_v27  ;;  %v514_v25 = vld [vmem:[#allocation3 + $0x180] sm:$0xff]  ;;  %v524_v27 = vld [vmem:[#allocation3 + $0x148] sm:$0xff] }
 0x3b0   :  { %v440_v35 = vmul.f32 %v436_v29, %v408_v31  ;;  %v434_v26 = vadd.f32 1.0, %v1228_v24  ;;  %v540_v24 = vld [vmem:[#allocation3 + $0x160] sm:$0xff]  ;;  %v597_v31 = vld [vmem:[#allocation3 + $0x1d8] sm:$0xff] }
 0x3b1   :  { %v439_v39 = vmul.f32 %v435_v34, %v407_v37 }
 0x3b2   :  { %v438_v40 = vmul.f32 %v434_v26, %v406_v38  ;;  %v541_v26 = vld [vmem:[#allocation3 + $0x168] sm:$0xff] }
 0x3b4   :  { %v447_v41 = vpack.c.bf16 %v439_v39, %v438_v40 }
 0x3b5   :  { %v1230_v30 = vpop.eup %1229 }
 0x3b6   :  { %v437_v33 = vadd.f32 1.0, %v1230_v30  ;;  %v572_v30 = vld [vmem:[#allocation3 + $0x1b8] sm:$0xff] }
 0x3b8   :  { %v441_v36 = vmul.f32 %v437_v33, %v409_v32 }
 0x3ba   :  { %v448_v28 = vpack.c.bf16 %v441_v36, %v440_v35  ;;  %v515_v35 = vld [vmem:[#allocation3 + $0x188] sm:$0xff] }
 0x3bc   :  { %476 = vmatpush.bf16.msrb.mxu0 %v448_v28  ;;  %v571_v28 = vld [vmem:[#allocation3 + $0x1b0] sm:$0xff] }
 0x3c0   :  { %477 = vmatpush.bf16.msrb.mxu0 %v447_v41 }
 0x3c3   :  { %1120 = vmatmul.msk.bf16.vlgmr.msrb.gmra.mxu0 %vm250_vm3, %v1195_v42  ;;  %v596_v42 = vld [vmem:[#allocation3 + $0x1d0] sm:$0xff] }
 0x3d3   :  { %1121 = vmatmul.msk.bf16.gmra.mxu0 %vm250_vm3, %v1196_v43 }
 0x440   :  { %v479_v45 = vpop.f32.mrf.mxu0 }
 0x441   :  { %v480_v46 = vadd.f32 %v479_v45, %v450_v44 }
 0x443   :  { %v1400_v47 = vadd.f32 %v480_v46, %v1331_v6 }
 0x445   :  { %497 = vrot.lane.b32.xlu0 %v1400_v47, %s1285_s1  ;;  %v518_v36 = vmul.f32 %v514_v25, %v1400_v47  ;;  %v1198_v25 = vld [vmem:[%s1553_s2 + $0x48] sm:$0xff] }
 0x448   :  { %v481_v48 = vpop.f32.mrf.mxu0 }
 0x449   :  { %v482_v55 = vadd.f32 %v481_v48, %v451_v53 }
 0x44b   :  { %v1410_v6 = vadd.f32 %v482_v55, %v1335_v9 }
 0x44d   :  { %v519_v44 = vmul.f32 %v515_v35, %v1410_v6 }
 0x450   :  { %v484_v50 = vpop.f32.mrf.mxu0 }
 0x451   :  { %v485_v51 = vadd.f32 %v484_v50, %v452_v49 }
 0x453   :  { %v1405_v52 = vadd.f32 %v485_v51, %v1339_v12  ;;  %v569_v51 = vld [vmem:[#allocation3 + $0x1a0] sm:$0xff] }
 0x455   :  { %501 = vrot.lane.b32.xlu1 %v1405_v52, %s1285_s1  ;;  %v520_v32 = vmul.f32 %v516_v19, %v1405_v52 }
 0x458   :  { %v486_v56 = vpop.f32.mrf.mxu0 }
 0x459   :  { %v487_v57 = vadd.f32 %v486_v56, %v453_v54  ;;  %v594_v54 = vld [vmem:[#allocation3 + $0x1c0] sm:$0xff] }
 0x45b   :  { %v1413_v58 = vadd.f32 %v487_v57, %v1343_v15 }
 0x45d   :  { %503 = vrot.lane.b32.xlu2 %v1413_v58, %s1285_s1  ;;  %499 = vrot.lane.b32.xlu1 %v1410_v6, %s1285_s1  ;;  %v521_v17 = vmul.f32 %v517_v7, %v1413_v58 }
 0x4b7   :  { %v504_v12 = vpop.permute.xlu2 %503  ;;  %v498_v59 = vpop.permute.xlu0 %497 }
 0x4b8   :  { %512 = vst.msk [vmem:[#allocation2 + $0x18] sm:$0xff] %vm111_vm2, %v504_v12 }
 0x4b9   :  { %509 = vst.msk [vmem:[#allocation2] sm:$0xff] %vm111_vm2, %v498_v59 }
 0x4bf   :  { %v530_v15 = vld [vmem:[#allocation2 + $0x18] sm:$0xff] }
 0x4c0   :  { %v527_v60 = vld [vmem:[#allocation2] sm:$0xff]  ;;  %v534_v10 = vmul.f32 %v530_v15, %v526_v5 }
 0x4c1   :  { %573 = vrot.lane.b32.xlu1 %v527_v60, %s1286_s0  ;;  %548 = vrot.lane.b32.xlu0 %v527_v60, %s1287_s30  ;;  %v531_v29 = vmul.f32 %v527_v60, %v523_v16 }
 0x4c2   :  { %v538_v20 = vadd.f32 %v534_v10, %v521_v17  ;;  %v619_v17 = vld [vmem:[#allocation3 + $0x1e0] sm:$0xff] }
 0x4c3   :  { %v535_v43 = vadd.f32 %v531_v29, %v518_v36  ;;  %v637_v29 = vld [vmem:[#allocation3 + $0x210] sm:$0xff] }
 0x4c7   :  { %v502_v9 = vpop.permute.xlu1 %501 }
 0x4c8   :  { %511 = vst.msk [vmem:[#allocation2 + $0x10] sm:$0xff] %vm111_vm2, %v502_v9 }
 0x4c9   :  { %554 = vrot.lane.b32.xlu0 %v530_v15, %s1287_s30 }
 0x4cf   :  { %v500_v61 = vpop.permute.xlu1 %499  ;;  %v529_v62 = vld [vmem:[#allocation2 + $0x10] sm:$0xff] }
 0x4d0   :  { %510 = vst.msk [vmem:[#allocation2 + $0x8] sm:$0xff] %vm111_vm2, %v500_v61  ;;  %552 = vrot.lane.b32.xlu2 %v529_v62, %s1287_s30  ;;  %v533_v23 = vmul.f32 %v529_v62, %v525_v11  ;;  %v622_v61 = vld [vmem:[#allocation3 + $0x1f8] sm:$0xff] }
 0x4d1   :  { %604 = vrot.lane.b32.xlu0 %v530_v15, %s1288_s6 }
 0x4d2   :  { %v537_v38 = vadd.f32 %v533_v23, %v520_v32  ;;  %v1197_v23 = vld [vmem:[%s1553_s2 + $0x40] sm:$0xff]  ;;  %v636_v32 = vld [vmem:[#allocation3 + $0x208] sm:$0xff] }
 0x4d7   :  { %v528_v63 = vld [vmem:[#allocation2 + $0x8] sm:$0xff] }
 0x4d8   :  { %602 = vrot.lane.b32.xlu2 %v529_v62, %s1288_s6  ;;  %550 = vrot.lane.b32.xlu1 %v528_v63, %s1287_s30  ;;  %v532_v37 = vmul.f32 %v528_v63, %v524_v27 }
 0x4d9   :  { %598 = vrot.lane.b32.xlu0 %v527_v60, %s1288_s6  ;;  %v570_v60 = vld [vmem:[#allocation3 + $0x1a8] sm:$0xff] }
 0x4da   :  { %v536_v53 = vadd.f32 %v532_v37, %v519_v44 }
 0x4e0   :  { %579 = vrot.lane.b32.xlu2 %v530_v15, %s1286_s0  ;;  %577 = vrot.lane.b32.xlu1 %v529_v62, %s1286_s0  ;;  %v621_v15 = vld [vmem:[#allocation3 + $0x1f0] sm:$0xff] }
 0x4e8   :  { %575 = vrot.lane.b32.xlu2 %v528_v63, %s1286_s0  ;;  %600 = vrot.lane.b32.xlu1 %v528_v63, %s1288_s6 }
 0x52a   :  { %v553_v1 = vpop.permute.xlu2 %552 }
 0x52b   :  { %v562_v33 = vmul.f32 %v553_v1, %v542_v21 }
 0x52d   :  { %v566_v46 = vadd.f32 %v562_v33, %v537_v38  ;;  %v638_v38 = vld [vmem:[#allocation3 + $0x218] sm:$0xff] }
 0x532   :  { %v603_v3 = vpop.permute.xlu2 %602 }
 0x533   :  { %v549_v0 = vpop.permute.xlu0 %548  ;;  %v574_v4 = vpop.permute.xlu1 %573  ;;  %v612_v56 = vmul.f32 %v603_v3, %v596_v42 }
 0x534   :  { %v560_v39 = vmul.f32 %v549_v0, %v540_v24  ;;  %v585_v62 = vmul.f32 %v574_v4, %v569_v51 }
 0x536   :  { %v564_v57 = vadd.f32 %v560_v39, %v535_v43 }
 0x538   :  { %v589_v7 = vadd.f32 %v585_v62, %v564_v57 }
 0x53a   :  { %v580_v22 = vpop.permute.xlu2 %579 }
 0x53b   :  { %v555_v2 = vpop.permute.xlu0 %554  ;;  %v588_v40 = vmul.f32 %v580_v22, %v572_v30 }
 0x53c   :  { %v563_v18 = vmul.f32 %v555_v2, %v543_v8  ;;  %v595_v2 = vld [vmem:[#allocation3 + $0x1c8] sm:$0xff] }
 0x53e   :  { %v567_v34 = vadd.f32 %v563_v18, %v538_v20  ;;  %v620_v18 = vld [vmem:[#allocation3 + $0x1e8] sm:$0xff]  ;;  %v635_v20 = vld [vmem:[#allocation3 + $0x200] sm:$0xff] }
 0x540   :  { %v592_v48 = vadd.f32 %v588_v40, %v567_v34 }
 0x542   :  { %v576_v9 = vpop.permute.xlu2 %575 }
 0x543   :  { %v605_v13 = vpop.permute.xlu0 %604  ;;  %v586_v5 = vmul.f32 %v576_v9, %v570_v60 }
 0x544   :  { %v613_v41 = vmul.f32 %v605_v13, %v597_v31 }
 0x546   :  { %v617_v12 = vadd.f32 %v613_v41, %v592_v48 }
 0x548   :  { %v626_v10 = vadd.f32 %v622_v61, %v617_v12 }
 0x54a   :  { %v551_v14 = vpop.permute.xlu1 %550 }
 0x54b   :  { %v561_v49 = vmul.f32 %v551_v14, %v541_v26  ;;  %v599_v55 = vpop.permute.xlu0 %598 }
 0x54c   :  { %v610_v0 = vmul.f32 %v599_v55, %v594_v54 }
 0x54d   :  { %v565_v63 = vadd.f32 %v561_v49, %v536_v53 }
 0x54e   :  { %v614_v13 = vadd.f32 %v610_v0, %v589_v7 }
 0x54f   :  { %v590_v14 = vadd.f32 %v586_v5, %v565_v63 }
 0x550   :  { %v623_v21 = vadd.f32 %v619_v17, %v614_v13 }
 0x552   :  { %v578_v45 = vpop.permute.xlu1 %577 }
 0x553   :  { %v587_v50 = vmul.f32 %v578_v45, %v571_v28 }
 0x555   :  { %v591_v59 = vadd.f32 %v587_v50, %v566_v46 }
 0x557   :  { %v616_v1 = vadd.f32 %v612_v56, %v591_v59 }
 0x559   :  { %v625_v8 = vadd.f32 %v621_v15, %v616_v1 }
 0x55a   :  { %v601_v11 = vpop.permute.xlu1 %600 }
 0x55b   :  { %v611_v3 = vmul.f32 %v601_v11, %v595_v2  ;;  %v633_v16 = vpack.c.bf16 %v626_v10, %v625_v8 }
 0x55d   :  { %v615_v19 = vadd.f32 %v611_v3, %v590_v14  ;;  %661 = vmatpush.bf16.msra.mxu1 %v633_v16  ;;  %1205 = vmatpush.bf16.msrb.mxu3 %v633_v16  ;;  %v1199_v3 = vld [vmem:[%s1553_s2 + $0x50] sm:$0xff]  ;;  %v1200_v16 = vld [vmem:[%s1553_s2 + $0x58] sm:$0xff] }
 0x55f   :  { %v624_v4 = vadd.f32 %v620_v18, %v615_v19 }
 0x561   :  { %v632_v22 = vpack.c.bf16 %v624_v4, %v623_v21  ;;  %v720_v21 = vld [vmem:[#allocation3 + $0x230] sm:$0xff]  ;;  %v721_v4 = vld [vmem:[#allocation3 + $0x238] sm:$0xff] }
 0x563   :  { %662 = vmatpush.bf16.msra.mxu1 %v632_v22  ;;  %1206 = vmatpush.bf16.msrb.mxu3 %v632_v22  ;;  %v719_v22 = vld [vmem:[#allocation3 + $0x228] sm:$0xff] }
 0x566   :  { %1134 = vmatmul.msk.bf16.vlgmr.msra.gmra.mxu1 %vm250_vm3, %v1197_v23  ;;  %1135 = vmatmul.msk.bf16.vlgmr.msrb.gmra.mxu3 %vm250_vm3, %v1198_v25 }
 0x5e3   :  { %v664_v27 = vpop.f32.mrf.mxu1 }
 0x5e4   :  { %v665_v24 = vadd.f32 %v664_v27, %v635_v20  ;;  %v718_v27 = vld [vmem:[#allocation3 + $0x220] sm:$0xff] }
 0x5e6   :  { %v678_v30 = vmul.f32 0.044715, %v665_v24  ;;  %v674_v10 = vmul.f32 0.5, %v665_v24 }
 0x5e8   :  { %v682_v37 = vmul.f32 %v678_v30, %v665_v24 }
 0x5e9   :  { %v669_v31 = vpop.f32.mrf.mxu3 }
 0x5ea   :  { %v670_v33 = vadd.f32 %v669_v31, %v637_v29  ;;  %v686_v42 = vmul.f32 %v682_v37, %v665_v24  ;;  %v765_v37 = vld [vmem:[#allocation3 + $0x240] sm:$0xff] }
 0x5eb   :  { %v666_v34 = vpop.f32.mrf.mxu1 }
 0x5ec   :  { %v680_v35 = vmul.f32 0.044715, %v670_v33  ;;  %v667_v36 = vadd.f32 %v666_v34, %v636_v32  ;;  %v690_v49 = vadd.f32 %v686_v42, %v665_v24  ;;  %v676_v61 = vmul.f32 0.5, %v670_v33  ;;  %v1201_v32 = vld [vmem:[%s1553_s2 + $0x60] sm:$0xff] }
 0x5ee   :  { %v684_v26 = vmul.f32 %v680_v35, %v670_v33  ;;  %v679_v28 = vmul.f32 0.044715, %v667_v36  ;;  %v694_v55 = vmul.f32 0.7978846, %v690_v49  ;;  %v675_v5 = vmul.f32 0.5, %v667_v36  ;;  %v766_v35 = vld [vmem:[#allocation3 + $0x248] sm:$0xff] }
 0x5f0   :  { %v688_v39 = vmul.f32 %v684_v26, %v670_v33  ;;  %v683_v40 = vmul.f32 %v679_v28, %v667_v36 }
 0x5f1   :  { %v671_v41 = vpop.f32.mrf.mxu3 }
 0x5f2   :  { %v692_v43 = vadd.f32 %v688_v39, %v670_v33  ;;  %v672_v44 = vadd.f32 %v671_v41, %v638_v38  ;;  %v687_v45 = vmul.f32 %v683_v40, %v667_v36  ;;  %v1202_v33 = vld [vmem:[%s1553_s2 + $0x68] sm:$0xff]  ;;  %v767_v38 = vld [vmem:[#allocation3 + $0x250] sm:$0xff] }
 0x5f4   :  { %v681_v46 = vmul.f32 0.044715, %v672_v44  ;;  %v691_v48 = vadd.f32 %v687_v45, %v667_v36  ;;  %v696_v50 = vmul.f32 0.7978846, %v692_v43  ;;  %v677_v62 = vmul.f32 0.5, %v672_v44 }
 0x5f6   :  { %v685_v51 = vmul.f32 %v681_v46, %v672_v44  ;;  %v695_v54 = vmul.f32 0.7978846, %v691_v48  ;;  %1231 = vtanh.f32 %v696_v50  ;;  %v768_v48 = vld [vmem:[#allocation3 + $0x258] sm:$0xff] }
 0x5f8   :  { %v689_v53 = vmul.f32 %v685_v51, %v672_v44  ;;  %1233 = vtanh.f32 %v695_v54 }
 0x5f9   :  { %1235 = vtanh.f32 %v694_v55 }
 0x5fa   :  { %v693_v56 = vadd.f32 %v689_v53, %v672_v44 }
 0x5fc   :  { %v697_v57 = vmul.f32 0.7978846, %v693_v56  ;;  %v1232_v12 = vpop.eup %1231 }
 0x5fd   :  { %v704_v9 = vadd.f32 1.0, %v1232_v12 }
 0x5fe   :  { %1237 = vtanh.f32 %v697_v57  ;;  %v1234_v59 = vpop.eup %1233 }
 0x5ff   :  { %v1236_v60 = vpop.eup %1235  ;;  %v703_v0 = vadd.f32 1.0, %v1234_v59  ;;  %v708_v1 = vmul.f32 %v704_v9, %v676_v61 }
 0x600   :  { %v702_v7 = vadd.f32 1.0, %v1236_v60 }
 0x601   :  { %v707_v11 = vmul.f32 %v703_v0, %v675_v5  ;;  %v901_v5 = vld [vmem:[%s1555_s4 + $0x30] sm:$0xff] }
 0x602   :  { %v706_v13 = vmul.f32 %v702_v7, %v674_v10 }
 0x604   :  { %v1238_v15 = vpop.eup %1237  ;;  %v715_v14 = vpack.c.bf16 %v707_v11, %v706_v13  ;;  %v900_v11 = vld [vmem:[%s1555_s4 + $0x28] sm:$0xff] }
 0x605   :  { %v705_v63 = vadd.f32 1.0, %v1238_v15 }
 0x607   :  { %v709_v2 = vmul.f32 %v705_v63, %v677_v62 }
 0x609   :  { %v716_v8 = vpack.c.bf16 %v709_v2, %v708_v1  ;;  %v902_v2 = vld [vmem:[%s1555_s4 + $0x38] sm:$0xff] }
 0x60a   :  { %936 = vmatpush.msrb.mxu1 %v902_v2 }
 0x60b   :  { %744 = vmatpush.bf16.msra.mxu2 %v716_v8 }
 0x60c   :  { %937 = vmatpush.msrb.mxu1 %v901_v5 }
 0x60e   :  { %938 = vmatpush.msrb.mxu1 %v900_v11 }
 0x60f   :  { %745 = vmatpush.bf16.msra.mxu2 %v715_v14 }
 0x612   :  { %1148 = vmatmul.msk.bf16.vlgmr.msra.gmra.mxu2 %vm250_vm3, %v1199_v3 }
 0x622   :  { %1149 = vmatmul.msk.bf16.gmra.mxu2 %vm250_vm3, %v1200_v16 }
 0x695   :  { %v747_v17 = vpop.f32.mrf.mxu2 }
 0x696   :  { %v748_v30 = vadd.f32 %v747_v17, %v718_v27  ;;  %v899_v17 = vld [vmem:[%s1555_s4 + $0x20] sm:$0xff] }
 0x697   :  { %939 = vmatpush.msrb.mxu1 %v899_v17 }
 0x69d   :  { %v749_v18 = vpop.f32.mrf.mxu2 }
 0x69e   :  { %v750_v24 = vadd.f32 %v749_v18, %v719_v22  ;;  %v898_v22 = vld [vmem:[%s1555_s4 + $0x18] sm:$0xff] }
 0x69f   :  { %940 = vmatpush.msrb.mxu1 %v898_v22 }
 0x6a0   :  { %v762_v31 = vpack.c.bf16 %v750_v24, %v748_v30  ;;  %v1204_v30 = vld [vmem:[%s1553_s2 + $0x78] sm:$0xff] }
 0x6a5   :  { %v752_v19 = vpop.f32.mrf.mxu2 }
 0x6a6   :  { %v753_v25 = vadd.f32 %v752_v19, %v720_v21 }
 0x6ad   :  { %v754_v23 = vpop.f32.mrf.mxu2 }
 0x6ae   :  { %v755_v20 = vadd.f32 %v754_v23, %v721_v4 }
 0x6b0   :  { %v763_v29 = vpack.c.bf16 %v755_v20, %v753_v25 }
 0x6b2   :  { %791 = vmatpush.bf16.msra.mxu3 %v763_v29  ;;  %v1203_v29 = vld [vmem:[%s1553_s2 + $0x70] sm:$0xff] }
 0x6b6   :  { %792 = vmatpush.bf16.msra.mxu3 %v762_v31  ;;  %v897_v31 = vld [vmem:[%s1555_s4 + $0x10] sm:$0xff] }
 0x6b7   :  { %941 = vmatpush.msrb.mxu1 %v897_v31 }
 0x6b9   :  { %1162 = vmatmul.msk.bf16.vlgmr.msra.gmra.mxu3 %vm250_vm3, %v1201_v32  ;;  %v896_v32 = vld [vmem:[%s1555_s4 + $0x8] sm:$0xff] }
 0x6ba   :  { %942 = vmatpush.msrb.mxu1 %v896_v32 }
 0x6c9   :  { %1163 = vmatmul.msk.bf16.gmra.mxu3 %vm250_vm3, %v1202_v33  ;;  %v895_v33 = vld [vmem:[%s1555_s4] sm:$0xff] }
 0x6ca   :  { %943 = vmatpush.msrb.mxu1 %v895_v33  ;;  %v1031_v33 = vld [vmem:[#allocation3 + $0x2a8] sm:$0xff] }
 0x73c   :  { %v794_v34 = vpop.f32.mrf.mxu3 }
 0x73d   :  { %v795_v28 = vadd.f32 %v794_v34, %v765_v37  ;;  %v848_v34 = vld [vmem:[#allocation3 + $0x260] sm:$0xff] }
 0x73f   :  { %v808_v40 = vmul.f32 0.044715, %v795_v28  ;;  %v804_v25 = vmul.f32 0.5, %v795_v28 }
 0x741   :  { %v812_v45 = vmul.f32 %v808_v40, %v795_v28  ;;  %v850_v40 = vld [vmem:[#allocation3 + $0x270] sm:$0xff] }
 0x743   :  { %v816_v53 = vmul.f32 %v812_v45, %v795_v28 }
 0x744   :  { %v796_v36 = vpop.f32.mrf.mxu3 }
 0x745   :  { %v797_v26 = vadd.f32 %v796_v36, %v766_v35  ;;  %v820_v12 = vadd.f32 %v816_v53, %v795_v28 }
 0x747   :  { %v809_v39 = vmul.f32 0.044715, %v797_v26  ;;  %v824_v61 = vmul.f32 0.7978846, %v820_v12  ;;  %v805_v21 = vmul.f32 0.5, %v797_v26 }
 0x749   :  { %v813_v43 = vmul.f32 %v809_v39, %v797_v26 }
 0x74b   :  { %v817_v50 = vmul.f32 %v813_v43, %v797_v26 }
 0x74c   :  { %v799_v41 = vpop.f32.mrf.mxu3 }
 0x74d   :  { %v800_v42 = vadd.f32 %v799_v41, %v767_v38  ;;  %v821_v57 = vadd.f32 %v817_v50, %v797_v26  ;;  %v849_v26 = vld [vmem:[#allocation3 + $0x268] sm:$0xff] }
 0x74f   :  { %v810_v44 = vmul.f32 0.044715, %v800_v42  ;;  %v825_v15 = vmul.f32 0.7978846, %v821_v57  ;;  %v806_v13 = vmul.f32 0.5, %v800_v42 }
 0x751   :  { %v814_v46 = vmul.f32 %v810_v44, %v800_v42 }
 0x753   :  { %v818_v49 = vmul.f32 %v814_v46, %v800_v42 }
 0x754   :  { %v801_v51 = vpop.f32.mrf.mxu3 }
 0x755   :  { %v822_v54 = vadd.f32 %v818_v49, %v800_v42  ;;  %v802_v55 = vadd.f32 %v801_v51, %v768_v48 }
 0x757   :  { %v811_v56 = vmul.f32 0.044715, %v802_v55  ;;  %v826_v59 = vmul.f32 0.7978846, %v822_v54  ;;  %v807_v14 = vmul.f32 0.5, %v802_v55 }
 0x759   :  { %v815_v60 = vmul.f32 %v811_v56, %v802_v55  ;;  %1239 = vtanh.f32 %v826_v59 }
 0x75a   :  { %1241 = vtanh.f32 %v825_v15 }
 0x75b   :  { %v819_v9 = vmul.f32 %v815_v60, %v802_v55  ;;  %1243 = vtanh.f32 %v824_v61 }
 0x75d   :  { %v823_v62 = vadd.f32 %v819_v9, %v802_v55 }
 0x75f   :  { %v827_v63 = vmul.f32 0.7978846, %v823_v62  ;;  %v1240_v0 = vpop.eup %1239 }
 0x760   :  { %v1242_v1 = vpop.eup %1241  ;;  %v834_v8 = vadd.f32 1.0, %v1240_v0 }
 0x761   :  { %1245 = vtanh.f32 %v827_v63  ;;  %v1244_v7 = vpop.eup %1243  ;;  %v833_v16 = vadd.f32 1.0, %v1242_v1 }
 0x762   :  { %v838_v18 = vmul.f32 %v834_v8, %v806_v13  ;;  %v832_v4 = vadd.f32 1.0, %v1244_v7 }
 0x763   :  { %v837_v20 = vmul.f32 %v833_v16, %v805_v21 }
 0x764   :  { %v836_v27 = vmul.f32 %v832_v4, %v804_v25 }
 0x766   :  { %v845_v24 = vpack.c.bf16 %v837_v20, %v836_v27 }
 0x767   :  { %v1246_v10 = vpop.eup %1245 }
 0x768   :  { %v835_v3 = vadd.f32 1.0, %v1246_v10 }
 0x76a   :  { %v839_v19 = vmul.f32 %v835_v3, %v807_v14  ;;  %v1030_v3 = vld [vmem:[#allocation3 + $0x2a0] sm:$0xff] }
 0x76c   :  { %v846_v23 = vpack.c.bf16 %v839_v19, %v838_v18  ;;  %v1039_v19 = vld [vmem:[#allocation3 + $0x2c0] sm:$0xff] }
 0x76e   :  { %874 = vmatpush.bf16.msra.mxu0 %v846_v23 }
 0x772   :  { %875 = vmatpush.bf16.msra.mxu0 %v845_v24 }
 0x775   :  { %1176 = vmatmul.msk.bf16.vlgmr.msra.gmra.mxu0 %vm250_vm3, %v1203_v29 }
 0x785   :  { %1177 = vmatmul.msk.bf16.gmra.mxu0 %vm250_vm3, %v1204_v30 }
 0x7f2   :  { %v877_v35 = vpop.f32.mrf.mxu0 }
 0x7f3   :  { %v878_v36 = vadd.f32 %v877_v35, %v848_v34 }
 0x7f5   :  { %v887_v37 = vadd.f32 %v878_v36, %v1400_v47  ;;  %v851_v47 = vld [vmem:[#allocation3 + $0x278] sm:$0xff]  ;;  %v1040_v36 = vld [vmem:[#allocation3 + $0x2c8] sm:$0xff] }
 0x7f7   :  { %1178 = vmatmul.msk.f32.vlgmr.msrb.gmra.mxu1 %vm903_vm4, %v887_v37 }
 0x7fa   :  { %v879_v28 = vpop.f32.mrf.mxu0 }
 0x7fb   :  { %v880_v38 = vadd.f32 %v879_v28, %v849_v26 }
 0x7fd   :  { %v1498_v39 = vadd.f32 %v880_v38, %v1410_v6  ;;  %v891_v6 = vmul.f32 %v887_v37, %v887_v37 }
 0x7ff   :  { %1179 = vmatmul.msk.f32.gmra.mxu1 %vm903_vm4, %v1498_v39  ;;  %v892_v48 = vmul.f32 %v1498_v39, %v1498_v39 }
 0x802   :  { %v882_v41 = vpop.f32.mrf.mxu0 }
 0x803   :  { %v883_v42 = vadd.f32 %v882_v41, %v850_v40 }
 0x805   :  { %v1503_v43 = vadd.f32 %v883_v42, %v1405_v52 }
 0x807   :  { %1180 = vmatmul.msk.f32.gmra.mxu1 %vm903_vm4, %v1503_v43  ;;  %v893_v52 = vmul.f32 %v1503_v43, %v1503_v43 }
 0x80a   :  { %v884_v44 = vpop.f32.mrf.mxu0 }
 0x80b   :  { %v885_v45 = vadd.f32 %v884_v44, %v851_v47  ;;  %v1032_v44 = vld [vmem:[#allocation3 + $0x2b0] sm:$0xff] }
 0x80d   :  { %v1508_v46 = vadd.f32 %v885_v45, %v1413_v58 }
 0x80f   :  { %1181 = vmatmul.msk.f32.gmra.mxu1 %vm903_vm4, %v1508_v46  ;;  %v894_v58 = vmul.f32 %v1508_v46, %v1508_v46 }
 0x817   :  { %1182 = vmatmul.msk.f32.gmra.mxu1 %vm903_vm4, %v891_v6 }
 0x81f   :  { %1183 = vmatmul.msk.f32.gmra.mxu1 %vm903_vm4, %v892_v48  ;;  %v1041_v48 = vld [vmem:[#allocation3 + $0x2d0] sm:$0xff] }
 0x827   :  { %1184 = vmatmul.msk.f32.gmra.mxu1 %vm903_vm4, %v893_v52 }
 0x82f   :  { %1185 = vmatmul.msk.f32.gmra.mxu1 %vm903_vm4, %v894_v58 }
 0x874   :  { %v945_v49 = vpop.f32.mrf.mxu1 }
 0x875   :  { %v969_v54 = vmul.f32 %v945_v49, %v945_v49  ;;  %v977_v13 = vsub.f32 %v887_v37, %v945_v49 }
 0x87c   :  { %v948_v50 = vpop.f32.mrf.mxu1 }
 0x87d   :  { %v970_v12 = vmul.f32 %v948_v50, %v948_v50  ;;  %v978_v31 = vsub.f32 %v1498_v39, %v948_v50 }
 0x884   :  { %v1522_v51 = vpop.f32.mrf.mxu1 }
 0x885   :  { %v971_v63 = vmul.f32 %v1522_v51, %v1522_v51  ;;  %v979_v42 = vsub.f32 %v1503_v43, %v1522_v51 }
 0x88c   :  { %v1524_v53 = vpop.f32.mrf.mxu1 }
 0x88d   :  { %v972_v17 = vmul.f32 %v1524_v53, %v1524_v53  ;;  %v980_v43 = vsub.f32 %v1508_v46, %v1524_v53 }
 0x894   :  { %v957_v55 = vpop.f32.mrf.mxu1 }
 0x895   :  { %v973_v56 = vsub.f32 %v957_v55, %v969_v54  ;;  %v1033_v55 = vld [vmem:[#allocation3 + $0x2b8] sm:$0xff] }
 0x897   :  { %v981_v57 = vadd.f32 1e-05, %v973_v56 }
 0x899   :  { %1247 = vrsqrt.f32 %v981_v57  ;;  %vm991_vm6 = vweird.f32 %v981_v57 }
 0x89c   :  { %v960_v59 = vpop.f32.mrf.mxu1 }
 0x89d   :  { %v974_v60 = vsub.f32 %v960_v59, %v970_v12 }
 0x89f   :  { %v1248_v9 = vpop.eup %1247  ;;  %v982_v15 = vadd.f32 1e-05, %v974_v60 }
 0x8a0   :  { %v986_v61 = vmul.f32 %v1248_v9, %v981_v57  ;;  %vm992_vm5 = vweird.f32 %v1248_v9  ;;  %v1042_v57 = vld [vmem:[#allocation3 + $0x2d8] sm:$0xff] }
 0x8a1   :  { %1249 = vrsqrt.f32 %v982_v15  ;;  %vm993_vm7 = vmor %vm991_vm6, %vm992_vm5  ;;  %vm1001_vm9 = vweird.f32 %v982_v15 }
 0x8a2   :  { %v987_v62 = vmul.f32 %v1248_v9, %v986_v61 }
 0x8a4   :  { %v988_v0 = vmul.f32 0.5, %v987_v62  ;;  %v963_v1 = vpop.f32.mrf.mxu1 }
 0x8a5   :  { %v975_v2 = vsub.f32 %v963_v1, %v971_v63 }
 0x8a6   :  { %v989_v5 = vsub.f32 1.5, %v988_v0 }
 0x8a7   :  { %v1250_v7 = vpop.eup %1249  ;;  %v983_v8 = vadd.f32 1e-05, %v975_v2 }
 0x8a8   :  { %v990_v10 = vmul.f32 %v1248_v9, %v989_v5  ;;  %v996_v11 = vmul.f32 %v1250_v7, %v982_v15  ;;  %vm1002_vm8 = vweird.f32 %v1250_v7 }
 0x8a9   :  { %1251 = vrsqrt.f32 %v983_v8  ;;  %vm1003_vm10 = vmor %vm1001_vm9, %vm1002_vm8  ;;  %vm1011_vm12 = vweird.f32 %v983_v8 }
 0x8aa   :  { %v994_v14 = vsel %vm993_vm7, %v1248_v9, %v990_v10  ;;  %v997_v16 = vmul.f32 %v1250_v7, %v996_v11 }
 0x8ab   :  { %v1025_v18 = vmul.f32 %v994_v14, %v977_v13 }
 0x8ac   :  { %v998_v21 = vmul.f32 0.5, %v997_v16  ;;  %v966_v4 = vpop.f32.mrf.mxu1 }
 0x8ad   :  { %v1034_v22 = vmul.f32 %v1030_v3, %v1025_v18  ;;  %v976_v23 = vsub.f32 %v966_v4, %v972_v17 }
 0x8ae   :  { %v999_v25 = vsub.f32 1.5, %v998_v21 }
 0x8af   :  { %v1252_v20 = vpop.eup %1251  ;;  %v1043_v27 = vadd.f32 %v1039_v19, %v1034_v22  ;;  %v984_v24 = vadd.f32 1e-05, %v976_v23 }
 0x8b0   :  { %v1000_v29 = vmul.f32 %v1250_v7, %v999_v25  ;;  %v1006_v30 = vmul.f32 %v1252_v20, %v983_v8  ;;  %vm1012_vm11 = vweird.f32 %v1252_v20 }
 0x8b1   :  { %1047 = vst.msk [vmem:[%s1556_s5] sm:$0xff] %vm903_vm4, %v1043_v27  ;;  %1253 = vrsqrt.f32 %v984_v24  ;;  %vm1013_vm13 = vmor %vm1011_vm12, %vm1012_vm11  ;;  %vm1021_vm15 = vweird.f32 %v984_v24 }
 0x8b2   :  { %v1004_v32 = vsel %vm1003_vm10, %v1250_v7, %v1000_v29  ;;  %v1007_v34 = vmul.f32 %v1252_v20, %v1006_v30 }
 0x8b3   :  { %v1026_v35 = vmul.f32 %v1004_v32, %v978_v31 }
 0x8b4   :  { %v1008_v37 = vmul.f32 0.5, %v1007_v34 }
 0x8b5   :  { %v1035_v26 = vmul.f32 %v1031_v33, %v1026_v35 }
 0x8b6   :  { %v1009_v28 = vsub.f32 1.5, %v1008_v37 }
 0x8b7   :  { %v1254_v38 = vpop.eup %1253  ;;  %v1044_v40 = vadd.f32 %v1040_v36, %v1035_v26 }
 0x8b8   :  { %v1010_v41 = vmul.f32 %v1252_v20, %v1009_v28  ;;  %v1016_v39 = vmul.f32 %v1254_v38, %v984_v24  ;;  %vm1022_vm14 = vweird.f32 %v1254_v38 }
 0x8b9   :  { %1048 = vst.msk [vmem:[%s1556_s5 + $0x8] sm:$0xff] %vm903_vm4, %v1044_v40  ;;  %vm1023_vm0 = vmor %vm1021_vm15, %vm1022_vm14 }
 0x8ba   :  { %v1014_v47 = vsel %vm1013_vm13, %v1252_v20, %v1010_v41  ;;  %v1017_v45 = vmul.f32 %v1254_v38, %v1016_v39 }
 0x8bb   :  { %v1027_v6 = vmul.f32 %v1014_v47, %v979_v42 }
 0x8bc   :  { %v1018_v52 = vmul.f32 0.5, %v1017_v45 }
 0x8bd   :  { %v1036_v58 = vmul.f32 %v1032_v44, %v1027_v6 }
 0x8be   :  { %v1019_v49 = vsub.f32 1.5, %v1018_v52 }
 0x8bf   :  { %v1045_v50 = vadd.f32 %v1041_v48, %v1036_v58 }
 0x8c0   :  { %v1020_v54 = vmul.f32 %v1254_v38, %v1019_v49 }
 0x8c1   :  { %1049 = vst.msk [vmem:[%s1556_s5 + $0x10] sm:$0xff] %vm903_vm4, %v1045_v50 }
 0x8c2   :  { %v1024_v51 = vsel %vm1023_vm0, %v1254_v38, %v1020_v54 }
 0x8c3   :  { %v1028_v56 = vmul.f32 %v1024_v51, %v980_v43 }
 0x8c5   :  { %v1037_v12 = vmul.f32 %v1033_v55, %v1028_v56 }
 0x8c7   :  { %v1046_v59 = vadd.f32 %v1042_v57, %v1037_v12 }
 0x8c9   :  { %1050 = vst.msk [vmem:[%s1556_s5 + $0x18] sm:$0xff] %vm903_vm4, %v1046_v59 }
 0x8ca   :  { %1055 = vsyncpa [#allocation4], 1 }

</bundles_post_ra>
